<compile_context>
chip_gen: v5e
topology: v5e:2x2
jax: 0.10.0
libtpu: 0.0.40
codegen_flags: <defaults>
</compile_context>

<pallas_src>
import functools

import jax
import jax.numpy as jnp
from jax import lax
from jax.experimental import pallas as pl
from jax.experimental.pallas import tpu as pltpu


def _round_up(a, m):
    return ((a + m - 1) // m) * m


def _conv3d_implicit_gemm_kernel(x_ref, w_ref, scale_ref, bias_ref, o_ref, *,
                                 offsets, dhw, negative_slope, apply_act):
    """One batch element per grid step.

    x_ref     : [1, Cin, DHWp]   bf16, padded flattened spatial axis (resident)
    w_ref     : [27, Cout, Cin]  f32, per-offset conv weight
    scale_ref : [Cout, 1]        f32, folded-BN scale
    bias_ref  : [Cout, 1]        f32, folded-BN shift
    o_ref     : [1, Cout, DHW]   conv result on the padded-position lane grid
    """
    xb = x_ref[0].astype(jnp.float32)                   # (Cin, DHWp) in VMEM/vregs
    acc = None
    for k, off in enumerate(offsets):
        # implicit im2col: statically shifted lane slice (no HBM patch matrix)
        xk = xb[:, off:off + dhw]                        # (Cin, DHW)
        part = jnp.dot(w_ref[k], xk, preferred_element_type=jnp.float32)
        acc = part if acc is None else acc + part        # (Cout, DHW) f32
    # fused pointwise epilogue (BN scale/shift + LeakyReLU) — free, HBM-bound
    y = acc * scale_ref[...] + bias_ref[...]
    if apply_act:
        y = jnp.where(y >= 0, y, negative_slope * y)
    o_ref[0] = y.astype(o_ref.dtype)


@functools.partial(
    jax.jit,
    static_argnames=("negative_slope", "apply_act", "out_dtype", "stream_dtype"))
def conv3d_bn_lrelu_forward(x, weight, scale=None, bias=None, *,
                            negative_slope=0.01, apply_act=True,
                            out_dtype=jnp.bfloat16, stream_dtype=jnp.bfloat16):
    """Conv3d(k=3, stride=1, valid, no bias) + per-channel affine + LeakyReLU.

    x: (N, Cin, D, H, W) NCDHW, weight: (Cout, Cin, 3, 3, 3). Returns NCDHW.
    With scale=None, bias=None, apply_act=False this is the plain conv.
    """
    N, Cin, D, H, W = x.shape
    Cout = weight.shape[0]
    assert weight.shape == (Cout, Cin, 3, 3, 3)
    assert D >= 3 and H >= 3 and W >= 3
    Do, Ho, Wo = D - 2, H - 2, W - 2
    HW = H * W
    DHW = D * HW
    offsets = tuple(kd * HW + kh * W + kw
                    for kd in range(3) for kh in range(3) for kw in range(3))
    DHWp = _round_up(DHW + offsets[-1], 128)             # halo pad, 128-aligned

    # ---- glue pass 1 (single fused XLA pass over x, no transpose): ----
    # NCDHW -> (N, Cin, D*H*W), zero-pad flat spatial axis, cast to bf16 stream.
    xf = x.reshape(N, Cin, DHW).astype(stream_dtype)
    xf = jnp.pad(xf, ((0, 0), (0, 0), (0, DHWp - DHW)))

    # per-offset weight [27, Cout, Cin], kept f32 (tiny; no weight quantization)
    w_off = jnp.transpose(weight.astype(jnp.float32),
                          (2, 3, 4, 0, 1)).reshape(27, Cout, Cin)

    if scale is None:
        scale = jnp.ones((Cout,), jnp.float32)
    if bias is None:
        bias = jnp.zeros((Cout,), jnp.float32)
    scale2 = scale.astype(jnp.float32).reshape(Cout, 1)
    bias2 = bias.astype(jnp.float32).reshape(Cout, 1)

    kernel = functools.partial(
        _conv3d_implicit_gemm_kernel,
        offsets=offsets, dhw=DHW,
        negative_slope=float(negative_slope), apply_act=apply_act)

    flops = 2 * N * Cout * Cin * 27 * DHW
    bytes_accessed = (xf.size * xf.dtype.itemsize
                      + w_off.size * 4
                      + N * Cout * DHW * jnp.dtype(out_dtype).itemsize)

    # ---- hot path: batch-parallel implicit-GEMM conv + fused epilogue ----
    out_flat = pl.pallas_call(
        kernel,
        out_shape=jax.ShapeDtypeStruct((N, Cout, DHW), out_dtype),
        grid_spec=pltpu.PrefetchScalarGridSpec(
            num_scalar_prefetch=0,
            grid=(N,),
            in_specs=[
                pl.BlockSpec((1, Cin, DHWp), lambda b: (b, 0, 0)),   # x block
                pl.BlockSpec((27, Cout, Cin), lambda b: (0, 0, 0)),  # weights
                pl.BlockSpec((Cout, 1), lambda b: (0, 0)),           # BN scale
                pl.BlockSpec((Cout, 1), lambda b: (0, 0)),           # BN shift
            ],
            out_specs=pl.BlockSpec((1, Cout, DHW), lambda b: (b, 0, 0)),
        ),
        compiler_params=pltpu.CompilerParams(
            dimension_semantics=("parallel",),
            vmem_limit_bytes=32 * 1024 * 1024,
        ),
        cost_estimate=pl.CostEstimate(
            flops=flops, transcendentals=0, bytes_accessed=bytes_accessed),
    )(xf, w_off, scale2, bias2)

    # ---- glue pass 2: free reshape + small halo crop (no major-axis transpose)
    out = out_flat.reshape(N, Cout, D, H, W)[:, :, :Do, :Ho, :Wo]
    return out


if __name__ == "__main__":
    # small shapes consistent with the module family: batch=2, in_channels=4,
    # out_channels=8, spatial cube 8^3 (>=3 along each spatial dim).
    N, Cin, Cout = 2, 4, 8
    D = H = W = 8

    key = jax.random.PRNGKey(0)
    kx, kw, ks, kb = jax.random.split(key, 4)
    x = jax.random.normal(kx, (N, Cin, D, H, W), dtype=jnp.float32)
    fan_in = Cin * 27
    bound = 1.0 / (fan_in ** 0.5)
    weight = jax.random.uniform(
        kw, (Cout, Cin, 3, 3, 3), minval=-bound, maxval=bound, dtype=jnp.float32)
    scale = 0.5 + jax.random.uniform(ks, (Cout,), dtype=jnp.float32)  # folded BN
    bias = 0.1 * jax.random.normal(kb, (Cout,), dtype=jnp.float32)    # folded BN

    # f32-output path: strict check against an XLA reference.
    out = conv3d_bn_lrelu_forward(x, weight, scale, bias, out_dtype=jnp.float32)
    out = jax.block_until_ready(out)

    # Reference: f32 conv on bf16-quantized activations (weights stay f32,
    # exactly like the kernel), then the same affine + LeakyReLU epilogue.
    xq = x.astype(jnp.bfloat16).astype(jnp.float32)
    ref = lax.conv_general_dilated(
        xq, weight, window_strides=(1, 1, 1), padding="VALID",
        dimension_numbers=("NCDHW", "OIDHW", "NCDHW"),
        precision=lax.Precision.HIGHEST)
    ref = ref * scale.reshape(1, Cout, 1, 1, 1) + bias.reshape(1, Cout, 1, 1, 1)
    ref = jnp.where(ref >= 0, ref, 0.01 * ref)

    assert out.shape == (N, Cout, D - 2, H - 2, W - 2)
    max_err = float(jnp.max(jnp.abs(out - ref)))
    assert jnp.allclose(out, ref, atol=2e-3, rtol=2e-3), max_err

    # bf16-output path (next layer consumes bf16): exercise + sanity-check.
    out_bf16 = conv3d_bn_lrelu_forward(x, weight, scale, bias,
                                       out_dtype=jnp.bfloat16)
    out_bf16 = jax.block_until_ready(out_bf16)
    assert out_bf16.dtype == jnp.bfloat16
    assert jnp.allclose(out_bf16.astype(jnp.float32), ref, atol=3e-2, rtol=3e-2)

    print("KERNEL_OK")
</pallas_src>

<mosaic_0001>
module attributes {stable_mosaic.version = 11 : i64} {
  func.func @_conv3d_implicit_gemm_kernel(%arg0: i32, %arg1: memref<1x4x768xbf16, #tpu.memory_space<vmem>>, %arg2: memref<27x8x4xf32, #tpu.memory_space<vmem>>, %arg3: memref<8x1xf32, #tpu.memory_space<vmem>>, %arg4: memref<8x1xf32, #tpu.memory_space<vmem>>, %arg5: memref<1x8x512xf32, #tpu.memory_space<vmem>>) attributes {dimension_semantics = [#tpu.dimension_semantics<parallel>], iteration_bounds = array<i64: 2>, scalar_prefetch = 0 : i64, scratch_operands = 0 : i64, tpu.core_type = #tpu.core_type<tc>, window_params = [{transform_indices = @transform_0, window_bounds = array<i64: 1, 4, 768>}, {pipeline_mode = #tpu.pipeline_mode<synchronous>, transform_indices = @transform_1, window_bounds = array<i64: 27, 8, 4>}, {pipeline_mode = #tpu.pipeline_mode<synchronous>, transform_indices = @transform_2, window_bounds = array<i64: 8, 1>}, {pipeline_mode = #tpu.pipeline_mode<synchronous>, transform_indices = @transform_3, window_bounds = array<i64: 8, 1>}, {transform_indices = @transform_4, window_bounds = array<i64: 1, 8, 512>}]} {
    %c0 = arith.constant 0 : index
    %c0_0 = arith.constant 0 : index
    %c0_1 = arith.constant 0 : index
    %0 = vector.load %arg1[%c0, %c0_0, %c0_1] : memref<1x4x768xbf16, #tpu.memory_space<vmem>>, vector<1x4x768xbf16>
    %1 = vector.shape_cast %0 : vector<1x4x768xbf16> to vector<4x768xbf16>
    %2 = arith.extf %1 : vector<4x768xbf16> to vector<4x768xf32>
    %3 = vector.extract_strided_slice %2 {offsets = [0, 0], sizes = [4, 512], strides = [1, 1]} : vector<4x768xf32> to vector<4x512xf32>
    %c0_2 = arith.constant 0 : index
    %c0_3 = arith.constant 0 : index
    %c0_4 = arith.constant 0 : index
    %4 = vector.load %arg2[%c0_2, %c0_3, %c0_4] : memref<27x8x4xf32, #tpu.memory_space<vmem>>, vector<1x8x4xf32>
    %5 = vector.shape_cast %4 : vector<1x8x4xf32> to vector<8x4xf32>
    %cst = arith.constant dense<0.000000e+00> : vector<8x512xf32>
    %6 = tpu.matmul %5, %3, %cst {dimension_numbers = #tpu.dot_dimension_numbers<[1], [0], [0], [1], [0, 0, 1, 1], [], []>} : vector<8x4xf32>, vector<4x512xf32>, vector<8x512xf32> -> vector<8x512xf32>
    %7 = vector.extract_strided_slice %2 {offsets = [0, 1], sizes = [4, 512], strides = [1, 1]} : vector<4x768xf32> to vector<4x512xf32>
    %c1 = arith.constant 1 : index
    %c0_5 = arith.constant 0 : index
    %c0_6 = arith.constant 0 : index
    %8 = vector.load %arg2[%c1, %c0_5, %c0_6] : memref<27x8x4xf32, #tpu.memory_space<vmem>>, vector<1x8x4xf32>
    %9 = vector.shape_cast %8 : vector<1x8x4xf32> to vector<8x4xf32>
    %cst_7 = arith.constant dense<0.000000e+00> : vector<8x512xf32>
    %10 = tpu.matmul %9, %7, %cst_7 {dimension_numbers = #tpu.dot_dimension_numbers<[1], [0], [0], [1], [0, 0, 1, 1], [], []>} : vector<8x4xf32>, vector<4x512xf32>, vector<8x512xf32> -> vector<8x512xf32>
    %11 = arith.addf %6, %10 : vector<8x512xf32>
    %12 = vector.extract_strided_slice %2 {offsets = [0, 2], sizes = [4, 512], strides = [1, 1]} : vector<4x768xf32> to vector<4x512xf32>
    %c2 = arith.constant 2 : index
    %c0_8 = arith.constant 0 : index
    %c0_9 = arith.constant 0 : index
    %13 = vector.load %arg2[%c2, %c0_8, %c0_9] : memref<27x8x4xf32, #tpu.memory_space<vmem>>, vector<1x8x4xf32>
    %14 = vector.shape_cast %13 : vector<1x8x4xf32> to vector<8x4xf32>
    %cst_10 = arith.constant dense<0.000000e+00> : vector<8x512xf32>
    %15 = tpu.matmul %14, %12, %cst_10 {dimension_numbers = #tpu.dot_dimension_numbers<[1], [0], [0], [1], [0, 0, 1, 1], [], []>} : vector<8x4xf32>, vector<4x512xf32>, vector<8x512xf32> -> vector<8x512xf32>
    %16 = arith.addf %11, %15 : vector<8x512xf32>
    %17 = vector.extract_strided_slice %2 {offsets = [0, 8], sizes = [4, 512], strides = [1, 1]} : vector<4x768xf32> to vector<4x512xf32>
    %c3 = arith.constant 3 : index
    %c0_11 = arith.constant 0 : index
    %c0_12 = arith.constant 0 : index
    %18 = vector.load %arg2[%c3, %c0_11, %c0_12] : memref<27x8x4xf32, #tpu.memory_space<vmem>>, vector<1x8x4xf32>
    %19 = vector.shape_cast %18 : vector<1x8x4xf32> to vector<8x4xf32>
    %cst_13 = arith.constant dense<0.000000e+00> : vector<8x512xf32>
    %20 = tpu.matmul %19, %17, %cst_13 {dimension_numbers = #tpu.dot_dimension_numbers<[1], [0], [0], [1], [0, 0, 1, 1], [], []>} : vector<8x4xf32>, vector<4x512xf32>, vector<8x512xf32> -> vector<8x512xf32>
    %21 = arith.addf %16, %20 : vector<8x512xf32>
    %22 = vector.extract_strided_slice %2 {offsets = [0, 9], sizes = [4, 512], strides = [1, 1]} : vector<4x768xf32> to vector<4x512xf32>
    %c4 = arith.constant 4 : index
    %c0_14 = arith.constant 0 : index
    %c0_15 = arith.constant 0 : index
    %23 = vector.load %arg2[%c4, %c0_14, %c0_15] : memref<27x8x4xf32, #tpu.memory_space<vmem>>, vector<1x8x4xf32>
    %24 = vector.shape_cast %23 : vector<1x8x4xf32> to vector<8x4xf32>
    %cst_16 = arith.constant dense<0.000000e+00> : vector<8x512xf32>
    %25 = tpu.matmul %24, %22, %cst_16 {dimension_numbers = #tpu.dot_dimension_numbers<[1], [0], [0], [1], [0, 0, 1, 1], [], []>} : vector<8x4xf32>, vector<4x512xf32>, vector<8x512xf32> -> vector<8x512xf32>
    %26 = arith.addf %21, %25 : vector<8x512xf32>
    %27 = vector.extract_strided_slice %2 {offsets = [0, 10], sizes = [4, 512], strides = [1, 1]} : vector<4x768xf32> to vector<4x512xf32>
    %c5 = arith.constant 5 : index
    %c0_17 = arith.constant 0 : index
    %c0_18 = arith.constant 0 : index
    %28 = vector.load %arg2[%c5, %c0_17, %c0_18] : memref<27x8x4xf32, #tpu.memory_space<vmem>>, vector<1x8x4xf32>
    %29 = vector.shape_cast %28 : vector<1x8x4xf32> to vector<8x4xf32>
    %cst_19 = arith.constant dense<0.000000e+00> : vector<8x512xf32>
    %30 = tpu.matmul %29, %27, %cst_19 {dimension_numbers = #tpu.dot_dimension_numbers<[1], [0], [0], [1], [0, 0, 1, 1], [], []>} : vector<8x4xf32>, vector<4x512xf32>, vector<8x512xf32> -> vector<8x512xf32>
    %31 = arith.addf %26, %30 : vector<8x512xf32>
    %32 = vector.extract_strided_slice %2 {offsets = [0, 16], sizes = [4, 512], strides = [1, 1]} : vector<4x768xf32> to vector<4x512xf32>
    %c6 = arith.constant 6 : index
    %c0_20 = arith.constant 0 : index
    %c0_21 = arith.constant 0 : index
    %33 = vector.load %arg2[%c6, %c0_20, %c0_21] : memref<27x8x4xf32, #tpu.memory_space<vmem>>, vector<1x8x4xf32>
    %34 = vector.shape_cast %33 : vector<1x8x4xf32> to vector<8x4xf32>
    %cst_22 = arith.constant dense<0.000000e+00> : vector<8x512xf32>
    %35 = tpu.matmul %34, %32, %cst_22 {dimension_numbers = #tpu.dot_dimension_numbers<[1], [0], [0], [1], [0, 0, 1, 1], [], []>} : vector<8x4xf32>, vector<4x512xf32>, vector<8x512xf32> -> vector<8x512xf32>
    %36 = arith.addf %31, %35 : vector<8x512xf32>
    %37 = vector.extract_strided_slice %2 {offsets = [0, 17], sizes = [4, 512], strides = [1, 1]} : vector<4x768xf32> to vector<4x512xf32>
    %c7 = arith.constant 7 : index
    %c0_23 = arith.constant 0 : index
    %c0_24 = arith.constant 0 : index
    %38 = vector.load %arg2[%c7, %c0_23, %c0_24] : memref<27x8x4xf32, #tpu.memory_space<vmem>>, vector<1x8x4xf32>
    %39 = vector.shape_cast %38 : vector<1x8x4xf32> to vector<8x4xf32>
    %cst_25 = arith.constant dense<0.000000e+00> : vector<8x512xf32>
    %40 = tpu.matmul %39, %37, %cst_25 {dimension_numbers = #tpu.dot_dimension_numbers<[1], [0], [0], [1], [0, 0, 1, 1], [], []>} : vector<8x4xf32>, vector<4x512xf32>, vector<8x512xf32> -> vector<8x512xf32>
    %41 = arith.addf %36, %40 : vector<8x512xf32>
    %42 = vector.extract_strided_slice %2 {offsets = [0, 18], sizes = [4, 512], strides = [1, 1]} : vector<4x768xf32> to vector<4x512xf32>
    %c8 = arith.constant 8 : index
    %c0_26 = arith.constant 0 : index
    %c0_27 = arith.constant 0 : index
    %43 = vector.load %arg2[%c8, %c0_26, %c0_27] : memref<27x8x4xf32, #tpu.memory_space<vmem>>, vector<1x8x4xf32>
    %44 = vector.shape_cast %43 : vector<1x8x4xf32> to vector<8x4xf32>
    %cst_28 = arith.constant dense<0.000000e+00> : vector<8x512xf32>
    %45 = tpu.matmul %44, %42, %cst_28 {dimension_numbers = #tpu.dot_dimension_numbers<[1], [0], [0], [1], [0, 0, 1, 1], [], []>} : vector<8x4xf32>, vector<4x512xf32>, vector<8x512xf32> -> vector<8x512xf32>
    %46 = arith.addf %41, %45 : vector<8x512xf32>
    %47 = vector.extract_strided_slice %2 {offsets = [0, 64], sizes = [4, 512], strides = [1, 1]} : vector<4x768xf32> to vector<4x512xf32>
    %c9 = arith.constant 9 : index
    %c0_29 = arith.constant 0 : index
    %c0_30 = arith.constant 0 : index
    %48 = vector.load %arg2[%c9, %c0_29, %c0_30] : memref<27x8x4xf32, #tpu.memory_space<vmem>>, vector<1x8x4xf32>
    %49 = vector.shape_cast %48 : vector<1x8x4xf32> to vector<8x4xf32>
    %cst_31 = arith.constant dense<0.000000e+00> : vector<8x512xf32>
    %50 = tpu.matmul %49, %47, %cst_31 {dimension_numbers = #tpu.dot_dimension_numbers<[1], [0], [0], [1], [0, 0, 1, 1], [], []>} : vector<8x4xf32>, vector<4x512xf32>, vector<8x512xf32> -> vector<8x512xf32>
    %51 = arith.addf %46, %50 : vector<8x512xf32>
    %52 = vector.extract_strided_slice %2 {offsets = [0, 65], sizes = [4, 512], strides = [1, 1]} : vector<4x768xf32> to vector<4x512xf32>
    %c10 = arith.constant 10 : index
    %c0_32 = arith.constant 0 : index
    %c0_33 = arith.constant 0 : index
    %53 = vector.load %arg2[%c10, %c0_32, %c0_33] : memref<27x8x4xf32, #tpu.memory_space<vmem>>, vector<1x8x4xf32>
    %54 = vector.shape_cast %53 : vector<1x8x4xf32> to vector<8x4xf32>
    %cst_34 = arith.constant dense<0.000000e+00> : vector<8x512xf32>
    %55 = tpu.matmul %54, %52, %cst_34 {dimension_numbers = #tpu.dot_dimension_numbers<[1], [0], [0], [1], [0, 0, 1, 1], [], []>} : vector<8x4xf32>, vector<4x512xf32>, vector<8x512xf32> -> vector<8x512xf32>
    %56 = arith.addf %51, %55 : vector<8x512xf32>
    %57 = vector.extract_strided_slice %2 {offsets = [0, 66], sizes = [4, 512], strides = [1, 1]} : vector<4x768xf32> to vector<4x512xf32>
    %c11 = arith.constant 11 : index
    %c0_35 = arith.constant 0 : index
    %c0_36 = arith.constant 0 : index
    %58 = vector.load %arg2[%c11, %c0_35, %c0_36] : memref<27x8x4xf32, #tpu.memory_space<vmem>>, vector<1x8x4xf32>
    %59 = vector.shape_cast %58 : vector<1x8x4xf32> to vector<8x4xf32>
    %cst_37 = arith.constant dense<0.000000e+00> : vector<8x512xf32>
    %60 = tpu.matmul %59, %57, %cst_37 {dimension_numbers = #tpu.dot_dimension_numbers<[1], [0], [0], [1], [0, 0, 1, 1], [], []>} : vector<8x4xf32>, vector<4x512xf32>, vector<8x512xf32> -> vector<8x512xf32>
    %61 = arith.addf %56, %60 : vector<8x512xf32>
    %62 = vector.extract_strided_slice %2 {offsets = [0, 72], sizes = [4, 512], strides = [1, 1]} : vector<4x768xf32> to vector<4x512xf32>
    %c12 = arith.constant 12 : index
    %c0_38 = arith.constant 0 : index
    %c0_39 = arith.constant 0 : index
    %63 = vector.load %arg2[%c12, %c0_38, %c0_39] : memref<27x8x4xf32, #tpu.memory_space<vmem>>, vector<1x8x4xf32>
    %64 = vector.shape_cast %63 : vector<1x8x4xf32> to vector<8x4xf32>
    %cst_40 = arith.constant dense<0.000000e+00> : vector<8x512xf32>
    %65 = tpu.matmul %64, %62, %cst_40 {dimension_numbers = #tpu.dot_dimension_numbers<[1], [0], [0], [1], [0, 0, 1, 1], [], []>} : vector<8x4xf32>, vector<4x512xf32>, vector<8x512xf32> -> vector<8x512xf32>
    %66 = arith.addf %61, %65 : vector<8x512xf32>
    %67 = vector.extract_strided_slice %2 {offsets = [0, 73], sizes = [4, 512], strides = [1, 1]} : vector<4x768xf32> to vector<4x512xf32>
    %c13 = arith.constant 13 : index
    %c0_41 = arith.constant 0 : index
    %c0_42 = arith.constant 0 : index
    %68 = vector.load %arg2[%c13, %c0_41, %c0_42] : memref<27x8x4xf32, #tpu.memory_space<vmem>>, vector<1x8x4xf32>
    %69 = vector.shape_cast %68 : vector<1x8x4xf32> to vector<8x4xf32>
    %cst_43 = arith.constant dense<0.000000e+00> : vector<8x512xf32>
    %70 = tpu.matmul %69, %67, %cst_43 {dimension_numbers = #tpu.dot_dimension_numbers<[1], [0], [0], [1], [0, 0, 1, 1], [], []>} : vector<8x4xf32>, vector<4x512xf32>, vector<8x512xf32> -> vector<8x512xf32>
    %71 = arith.addf %66, %70 : vector<8x512xf32>
    %72 = vector.extract_strided_slice %2 {offsets = [0, 74], sizes = [4, 512], strides = [1, 1]} : vector<4x768xf32> to vector<4x512xf32>
    %c14 = arith.constant 14 : index
    %c0_44 = arith.constant 0 : index
    %c0_45 = arith.constant 0 : index
    %73 = vector.load %arg2[%c14, %c0_44, %c0_45] : memref<27x8x4xf32, #tpu.memory_space<vmem>>, vector<1x8x4xf32>
    %74 = vector.shape_cast %73 : vector<1x8x4xf32> to vector<8x4xf32>
    %cst_46 = arith.constant dense<0.000000e+00> : vector<8x512xf32>
    %75 = tpu.matmul %74, %72, %cst_46 {dimension_numbers = #tpu.dot_dimension_numbers<[1], [0], [0], [1], [0, 0, 1, 1], [], []>} : vector<8x4xf32>, vector<4x512xf32>, vector<8x512xf32> -> vector<8x512xf32>
    %76 = arith.addf %71, %75 : vector<8x512xf32>
    %77 = vector.extract_strided_slice %2 {offsets = [0, 80], sizes = [4, 512], strides = [1, 1]} : vector<4x768xf32> to vector<4x512xf32>
    %c15 = arith.constant 15 : index
    %c0_47 = arith.constant 0 : index
    %c0_48 = arith.constant 0 : index
    %78 = vector.load %arg2[%c15, %c0_47, %c0_48] : memref<27x8x4xf32, #tpu.memory_space<vmem>>, vector<1x8x4xf32>
    %79 = vector.shape_cast %78 : vector<1x8x4xf32> to vector<8x4xf32>
    %cst_49 = arith.constant dense<0.000000e+00> : vector<8x512xf32>
    %80 = tpu.matmul %79, %77, %cst_49 {dimension_numbers = #tpu.dot_dimension_numbers<[1], [0], [0], [1], [0, 0, 1, 1], [], []>} : vector<8x4xf32>, vector<4x512xf32>, vector<8x512xf32> -> vector<8x512xf32>
    %81 = arith.addf %76, %80 : vector<8x512xf32>
    %82 = vector.extract_strided_slice %2 {offsets = [0, 81], sizes = [4, 512], strides = [1, 1]} : vector<4x768xf32> to vector<4x512xf32>
    %c16 = arith.constant 16 : index
    %c0_50 = arith.constant 0 : index
    %c0_51 = arith.constant 0 : index
    %83 = vector.load %arg2[%c16, %c0_50, %c0_51] : memref<27x8x4xf32, #tpu.memory_space<vmem>>, vector<1x8x4xf32>
    %84 = vector.shape_cast %83 : vector<1x8x4xf32> to vector<8x4xf32>
    %cst_52 = arith.constant dense<0.000000e+00> : vector<8x512xf32>
    %85 = tpu.matmul %84, %82, %cst_52 {dimension_numbers = #tpu.dot_dimension_numbers<[1], [0], [0], [1], [0, 0, 1, 1], [], []>} : vector<8x4xf32>, vector<4x512xf32>, vector<8x512xf32> -> vector<8x512xf32>
    %86 = arith.addf %81, %85 : vector<8x512xf32>
    %87 = vector.extract_strided_slice %2 {offsets = [0, 82], sizes = [4, 512], strides = [1, 1]} : vector<4x768xf32> to vector<4x512xf32>
    %c17 = arith.constant 17 : index
    %c0_53 = arith.constant 0 : index
    %c0_54 = arith.constant 0 : index
    %88 = vector.load %arg2[%c17, %c0_53, %c0_54] : memref<27x8x4xf32, #tpu.memory_space<vmem>>, vector<1x8x4xf32>
    %89 = vector.shape_cast %88 : vector<1x8x4xf32> to vector<8x4xf32>
    %cst_55 = arith.constant dense<0.000000e+00> : vector<8x512xf32>
    %90 = tpu.matmul %89, %87, %cst_55 {dimension_numbers = #tpu.dot_dimension_numbers<[1], [0], [0], [1], [0, 0, 1, 1], [], []>} : vector<8x4xf32>, vector<4x512xf32>, vector<8x512xf32> -> vector<8x512xf32>
    %91 = arith.addf %86, %90 : vector<8x512xf32>
    %92 = vector.extract_strided_slice %2 {offsets = [0, 128], sizes = [4, 512], strides = [1, 1]} : vector<4x768xf32> to vector<4x512xf32>
    %c18 = arith.constant 18 : index
    %c0_56 = arith.constant 0 : index
    %c0_57 = arith.constant 0 : index
    %93 = vector.load %arg2[%c18, %c0_56, %c0_57] : memref<27x8x4xf32, #tpu.memory_space<vmem>>, vector<1x8x4xf32>
    %94 = vector.shape_cast %93 : vector<1x8x4xf32> to vector<8x4xf32>
    %cst_58 = arith.constant dense<0.000000e+00> : vector<8x512xf32>
    %95 = tpu.matmul %94, %92, %cst_58 {dimension_numbers = #tpu.dot_dimension_numbers<[1], [0], [0], [1], [0, 0, 1, 1], [], []>} : vector<8x4xf32>, vector<4x512xf32>, vector<8x512xf32> -> vector<8x512xf32>
    %96 = arith.addf %91, %95 : vector<8x512xf32>
    %97 = vector.extract_strided_slice %2 {offsets = [0, 129], sizes = [4, 512], strides = [1, 1]} : vector<4x768xf32> to vector<4x512xf32>
    %c19 = arith.constant 19 : index
    %c0_59 = arith.constant 0 : index
    %c0_60 = arith.constant 0 : index
    %98 = vector.load %arg2[%c19, %c0_59, %c0_60] : memref<27x8x4xf32, #tpu.memory_space<vmem>>, vector<1x8x4xf32>
    %99 = vector.shape_cast %98 : vector<1x8x4xf32> to vector<8x4xf32>
    %cst_61 = arith.constant dense<0.000000e+00> : vector<8x512xf32>
    %100 = tpu.matmul %99, %97, %cst_61 {dimension_numbers = #tpu.dot_dimension_numbers<[1], [0], [0], [1], [0, 0, 1, 1], [], []>} : vector<8x4xf32>, vector<4x512xf32>, vector<8x512xf32> -> vector<8x512xf32>
    %101 = arith.addf %96, %100 : vector<8x512xf32>
    %102 = vector.extract_strided_slice %2 {offsets = [0, 130], sizes = [4, 512], strides = [1, 1]} : vector<4x768xf32> to vector<4x512xf32>
    %c20 = arith.constant 20 : index
    %c0_62 = arith.constant 0 : index
    %c0_63 = arith.constant 0 : index
    %103 = vector.load %arg2[%c20, %c0_62, %c0_63] : memref<27x8x4xf32, #tpu.memory_space<vmem>>, vector<1x8x4xf32>
    %104 = vector.shape_cast %103 : vector<1x8x4xf32> to vector<8x4xf32>
    %cst_64 = arith.constant dense<0.000000e+00> : vector<8x512xf32>
    %105 = tpu.matmul %104, %102, %cst_64 {dimension_numbers = #tpu.dot_dimension_numbers<[1], [0], [0], [1], [0, 0, 1, 1], [], []>} : vector<8x4xf32>, vector<4x512xf32>, vector<8x512xf32> -> vector<8x512xf32>
    %106 = arith.addf %101, %105 : vector<8x512xf32>
    %107 = vector.extract_strided_slice %2 {offsets = [0, 136], sizes = [4, 512], strides = [1, 1]} : vector<4x768xf32> to vector<4x512xf32>
    %c21 = arith.constant 21 : index
    %c0_65 = arith.constant 0 : index
    %c0_66 = arith.constant 0 : index
    %108 = vector.load %arg2[%c21, %c0_65, %c0_66] : memref<27x8x4xf32, #tpu.memory_space<vmem>>, vector<1x8x4xf32>
    %109 = vector.shape_cast %108 : vector<1x8x4xf32> to vector<8x4xf32>
    %cst_67 = arith.constant dense<0.000000e+00> : vector<8x512xf32>
    %110 = tpu.matmul %109, %107, %cst_67 {dimension_numbers = #tpu.dot_dimension_numbers<[1], [0], [0], [1], [0, 0, 1, 1], [], []>} : vector<8x4xf32>, vector<4x512xf32>, vector<8x512xf32> -> vector<8x512xf32>
    %111 = arith.addf %106, %110 : vector<8x512xf32>
    %112 = vector.extract_strided_slice %2 {offsets = [0, 137], sizes = [4, 512], strides = [1, 1]} : vector<4x768xf32> to vector<4x512xf32>
    %c22 = arith.constant 22 : index
    %c0_68 = arith.constant 0 : index
    %c0_69 = arith.constant 0 : index
    %113 = vector.load %arg2[%c22, %c0_68, %c0_69] : memref<27x8x4xf32, #tpu.memory_space<vmem>>, vector<1x8x4xf32>
    %114 = vector.shape_cast %113 : vector<1x8x4xf32> to vector<8x4xf32>
    %cst_70 = arith.constant dense<0.000000e+00> : vector<8x512xf32>
    %115 = tpu.matmul %114, %112, %cst_70 {dimension_numbers = #tpu.dot_dimension_numbers<[1], [0], [0], [1], [0, 0, 1, 1], [], []>} : vector<8x4xf32>, vector<4x512xf32>, vector<8x512xf32> -> vector<8x512xf32>
    %116 = arith.addf %111, %115 : vector<8x512xf32>
    %117 = vector.extract_strided_slice %2 {offsets = [0, 138], sizes = [4, 512], strides = [1, 1]} : vector<4x768xf32> to vector<4x512xf32>
    %c23 = arith.constant 23 : index
    %c0_71 = arith.constant 0 : index
    %c0_72 = arith.constant 0 : index
    %118 = vector.load %arg2[%c23, %c0_71, %c0_72] : memref<27x8x4xf32, #tpu.memory_space<vmem>>, vector<1x8x4xf32>
    %119 = vector.shape_cast %118 : vector<1x8x4xf32> to vector<8x4xf32>
    %cst_73 = arith.constant dense<0.000000e+00> : vector<8x512xf32>
    %120 = tpu.matmul %119, %117, %cst_73 {dimension_numbers = #tpu.dot_dimension_numbers<[1], [0], [0], [1], [0, 0, 1, 1], [], []>} : vector<8x4xf32>, vector<4x512xf32>, vector<8x512xf32> -> vector<8x512xf32>
    %121 = arith.addf %116, %120 : vector<8x512xf32>
    %122 = vector.extract_strided_slice %2 {offsets = [0, 144], sizes = [4, 512], strides = [1, 1]} : vector<4x768xf32> to vector<4x512xf32>
    %c24 = arith.constant 24 : index
    %c0_74 = arith.constant 0 : index
    %c0_75 = arith.constant 0 : index
    %123 = vector.load %arg2[%c24, %c0_74, %c0_75] : memref<27x8x4xf32, #tpu.memory_space<vmem>>, vector<1x8x4xf32>
    %124 = vector.shape_cast %123 : vector<1x8x4xf32> to vector<8x4xf32>
    %cst_76 = arith.constant dense<0.000000e+00> : vector<8x512xf32>
    %125 = tpu.matmul %124, %122, %cst_76 {dimension_numbers = #tpu.dot_dimension_numbers<[1], [0], [0], [1], [0, 0, 1, 1], [], []>} : vector<8x4xf32>, vector<4x512xf32>, vector<8x512xf32> -> vector<8x512xf32>
    %126 = arith.addf %121, %125 : vector<8x512xf32>
    %127 = vector.extract_strided_slice %2 {offsets = [0, 145], sizes = [4, 512], strides = [1, 1]} : vector<4x768xf32> to vector<4x512xf32>
    %c25 = arith.constant 25 : index
    %c0_77 = arith.constant 0 : index
    %c0_78 = arith.constant 0 : index
    %128 = vector.load %arg2[%c25, %c0_77, %c0_78] : memref<27x8x4xf32, #tpu.memory_space<vmem>>, vector<1x8x4xf32>
    %129 = vector.shape_cast %128 : vector<1x8x4xf32> to vector<8x4xf32>
    %cst_79 = arith.constant dense<0.000000e+00> : vector<8x512xf32>
    %130 = tpu.matmul %129, %127, %cst_79 {dimension_numbers = #tpu.dot_dimension_numbers<[1], [0], [0], [1], [0, 0, 1, 1], [], []>} : vector<8x4xf32>, vector<4x512xf32>, vector<8x512xf32> -> vector<8x512xf32>
    %131 = arith.addf %126, %130 : vector<8x512xf32>
    %132 = vector.extract_strided_slice %2 {offsets = [0, 146], sizes = [4, 512], strides = [1, 1]} : vector<4x768xf32> to vector<4x512xf32>
    %c26 = arith.constant 26 : index
    %c0_80 = arith.constant 0 : index
    %c0_81 = arith.constant 0 : index
    %133 = vector.load %arg2[%c26, %c0_80, %c0_81] : memref<27x8x4xf32, #tpu.memory_space<vmem>>, vector<1x8x4xf32>
    %134 = vector.shape_cast %133 : vector<1x8x4xf32> to vector<8x4xf32>
    %cst_82 = arith.constant dense<0.000000e+00> : vector<8x512xf32>
    %135 = tpu.matmul %134, %132, %cst_82 {dimension_numbers = #tpu.dot_dimension_numbers<[1], [0], [0], [1], [0, 0, 1, 1], [], []>} : vector<8x4xf32>, vector<4x512xf32>, vector<8x512xf32> -> vector<8x512xf32>
    %136 = arith.addf %131, %135 : vector<8x512xf32>
    %c0_83 = arith.constant 0 : index
    %c0_84 = arith.constant 0 : index
    %137 = vector.load %arg3[%c0_83, %c0_84] : memref<8x1xf32, #tpu.memory_space<vmem>>, vector<8x1xf32>
    %138 = vector.broadcast %137 : vector<8x1xf32> to vector<8x512xf32>
    %139 = arith.mulf %136, %138 : vector<8x512xf32>
    %c0_85 = arith.constant 0 : index
    %c0_86 = arith.constant 0 : index
    %140 = vector.load %arg4[%c0_85, %c0_86] : memref<8x1xf32, #tpu.memory_space<vmem>>, vector<8x1xf32>
    %141 = vector.broadcast %140 : vector<8x1xf32> to vector<8x512xf32>
    %142 = arith.addf %139, %141 : vector<8x512xf32>
    %cst_87 = arith.constant 0.000000e+00 : f32
    %143 = vector.broadcast %cst_87 : f32 to vector<8x512xf32>
    %144 = arith.cmpf oge, %142, %143 : vector<8x512xf32>
    %cst_88 = arith.constant 0.00999999977 : f32
    %145 = vector.broadcast %cst_88 : f32 to vector<8x512xf32>
    %146 = arith.mulf %145, %142 : vector<8x512xf32>
    %147 = arith.select %144, %142, %146 : vector<8x512xi1>, vector<8x512xf32>
    %c0_89 = arith.constant 0 : index
    %c0_90 = arith.constant 0 : index
    %c0_91 = arith.constant 0 : index
    %148 = vector.load %arg5[%c0_89, %c0_90, %c0_91] : memref<1x8x512xf32, #tpu.memory_space<vmem>>, vector<1x8x512xf32>
    %149 = vector.shape_cast %148 : vector<1x8x512xf32> to vector<8x512xf32>
    %150 = vector.shape_cast %147 : vector<8x512xf32> to vector<1x8x512xf32>
    tpu.vector_store %arg5[%c0_89, %c0_90, %c0_91], %150 {strides = array<i32>} : memref<1x8x512xf32, #tpu.memory_space<vmem>>, vector<1x8x512xf32>,
    return
  }
  func.func @transform_0(%arg0: i32) -> (i32, i32, i32) {
    %c0_i32 = arith.constant 0 : i32
    %c0_i32_0 = arith.constant 0 : i32
    %c0_i32_1 = arith.constant 0 : i32
    return %arg0, %c0_i32, %c0_i32_0 : i32, i32, i32
  }
  func.func @transform_1(%arg0: i32) -> (i32, i32, i32) {
    %c0_i32 = arith.constant 0 : i32
    %c0_i32_0 = arith.constant 0 : i32
    %c0_i32_1 = arith.constant 0 : i32
    %c0_i32_2 = arith.constant 0 : i32
    return %c0_i32, %c0_i32_0, %c0_i32_1 : i32, i32, i32
  }
  func.func @transform_2(%arg0: i32) -> (i32, i32) {
    %c0_i32 = arith.constant 0 : i32
    %c0_i32_0 = arith.constant 0 : i32
    %c0_i32_1 = arith.constant 0 : i32
    return %c0_i32, %c0_i32_0 : i32, i32
  }
  func.func @transform_3(%arg0: i32) -> (i32, i32) {
    %c0_i32 = arith.constant 0 : i32
    %c0_i32_0 = arith.constant 0 : i32
    %c0_i32_1 = arith.constant 0 : i32
    return %c0_i32, %c0_i32_0 : i32, i32
  }
  func.func @transform_4(%arg0: i32) -> (i32, i32, i32) {
    %c0_i32 = arith.constant 0 : i32
    %c0_i32_0 = arith.constant 0 : i32
    %c0_i32_1 = arith.constant 0 : i32
    return %arg0, %c0_i32, %c0_i32_0 : i32, i32, i32
  }
}

</mosaic_0001>

<bundles_post_ra>
// kernel: conv3d_bn_lrelu_forward.1
= control target key start
LH: loop header
LB: loop body
LE: loop exit
PB: predicated region body
PF: predicated region fallthrough
CT: control target
= control target key end

     0   :  { %s3875_s15 = smov 0   ;;  %s4763_s0 = inlined_call_operand.vmem [shape: bf16[2,4,768], index: 0, kind: input, shape index: {}]   ;;  %s4764_s1 = inlined_call_operand.vmem [shape: f32[27,8,4], index: 1, kind: input, shape index: {}]   ;;  %s4765_s2 = inlined_call_operand.vmem [shape: f32[8,1], index: 2, kind: input, shape index: {}]   ;;  %s4766_s3 = inlined_call_operand.vmem [shape: f32[8,1], index: 3, kind: input, shape index: {}]   ;;  %s4767_s4 = inlined_call_operand.vmem [shape: f32[2,8,512], index: 4, kind: output, shape index: {}]  }
   0x1 LB: > { %s3542_s16 = sadd.s32 4294967295, %s3830_s15   ;;  %p3546_p0 = scmp.ge.s32.totalorder %s3830_s15, 1  ;;  %s3830_s15 = sphi %s3875_s15, %s14_s15  }
   0x2   : > { %p162_p1 = scmp.lt.s32.totalorder %s3830_s15, 3 }
   0x4   : > { %p163_p2 = pnand %p3546_p0, %p162_p1 }
   0x5   : > { %p188_p3 = scmp.lt.s32.totalorder (!%p163_p2), %s3542_s16, 1  ;;  %s3832_s21 = smov (!%p163_p2), 127  }
   0x6   : > { %166 = sbr.rel (%p163_p2) target bundleno = 611 (0x263), region = 36  ;;  %s3833_s22 = smov (!%p163_p2), 126  }
   0x7   : > { %s3834_s23 = smov (!%p163_p2), 120   ;;  %s3835_s24 = smov (!%p163_p2), 119  }
   0x8   : > { %s3836_s25 = smov (!%p163_p2), 118   ;;  %s3837_s26 = smov (!%p163_p2), 112  }
   0x9   : > { %s3838_s27 = smov (!%p163_p2), 111   ;;  %s3839_s28 = smov (!%p163_p2), 110  }
   0xa   : > { %s3840_s29 = smov (!%p163_p2), 64   ;;  %s3841_s6 = smov (!%p163_p2), 63  }
   0xb   : > { %s4769_s16 = smov (!%p188_p3, %s3542_s16), 1  ;;  %vm229_vm0 = vcmask 1039360   ;;  %vm238_vm1 = vcmask 1043456   ;;  %vm234_vm2 = vcmask 31744   ;;  %vm447_vm3 = vcmask 1031168   ;;  %s3842_s9 = smov 62  }
   0xc   : > { %s3795_s17 = smul.u32 12, %s4769_s16  ;;  %vm569_vm4 = vcmask 982016   ;;  %s3843_s12 = smov 56   ;;  %vm691_vm5 = vcmask 973824   ;;  %vm813_vm6 = vcmask 965632   ;;  %vm935_vm7 = vcmask 916480  }
   0xd   : > { %s3844_s19 = smov 55   ;;  %s3845_s30 = smov 54   ;;  %vm1057_vm8 = vcmask 908288   ;;  %vm1179_vm9 = vcmask 900096   ;;  %vm1301_vm10 = vcmask 523264   ;;  %vm1423_vm11 = vcmask 515072  }
   0xe   : > { %s192_s20 = scalar_lea.vmem %s4763_s0, %s3795_s17  ;;  %s3846_s7 = smov 48   ;;  %vm1545_vm12 = vcmask 506880   ;;  %vm1667_vm13 = vcmask 457728   ;;  %vm1789_vm14 = vcmask 449536   ;;  %vm1911_vm15 = vcmask 441344  }
   0xf   : > { %v199_v0 = vld [vmem:[%s192_s20 + $0x8] sm:$0xf]  ;;  %v198_v1 = vld [vmem:[%s192_s20] sm:$0xff]  ;;  %s3847_s10 = smov 47   ;;  %s3848_s13 = smov 46  }
  0x10   : > { %v3889_v2 = vunpack.c.l.bf16 %v199_v0  ;;  %v3891_v3 = vunpack.c.l.bf16 %v198_v1  ;;  %v3893_v4 = vunpack.c.h.bf16 %v198_v1 }
  0x12   : > { %213 = vst [vmem:[#allocation1 + $0x20] ss:$2 sm:$0xff] %v3889_v2 }
  0x13   : > { %209 = vst [vmem:[#allocation1] ss:$2 sm:$0xff] %v3891_v3 }
  0x14   : > { %211 = vst [vmem:[#allocation1 + $0x10] ss:$2 sm:$0xff] %v3893_v4 }
  0x19   : > { %v218_v5 = vld.sshfl [vmem:[#allocation1 + $0x20] sm:$0xff pattern:$0x75316420] }
  0x1a   : > { %227 = vrot.lane.b32.xlu1 %v218_v5, %s3832_s21  ;;  %431 = vst [vmem:[#allocation1 + $0x20] ss:$2 sm:$0xff] %v3889_v2  ;;  %v214_v6 = vld.sshfl [vmem:[#allocation1] sm:$0xff pattern:$0x75316420] }
  0x1b   : > { %v216_v7 = vld.sshfl [vmem:[#allocation1 + $0x10] sm:$0xff pattern:$0x75316420]  ;;  %v217_v8 = vld.sshfl [vmem:[#allocation1 + $0x18] sm:$0xff pattern:$0x75316420] }
  0x1c   : > { %223 = vrot.lane.b32.xlu0 %v216_v7, %s3832_s21  ;;  %329 = vst [vmem:[#allocation1 + $0x10] ss:$2 sm:$0xff] %v3893_v4  ;;  %v215_v9 = vld.sshfl [vmem:[#allocation1 + $0x8] sm:$0xff pattern:$0x75316420] }
  0x1d   : > { %221 = vrot.lane.b32.xlu2 %v215_v9, %s3832_s21  ;;  %327 = vst [vmem:[#allocation1] ss:$2 sm:$0xff] %v3891_v3 }
  0x21   : > { %v436_v10 = vld.sshfl [vmem:[#allocation1 + $0x20] sm:$0xff pattern:$0x75316420] }
  0x22   : > { %219 = vrot.lane.b32.xlu1 %v214_v6, %s3832_s21  ;;  %553 = vst [vmem:[#allocation1 + $0x20] ss:$2 sm:$0xff] %v3889_v2 }
  0x23   : > { %v3906_v11 = vld.sshfl [vmem:[#allocation1 + $0x10] sm:$0xff pattern:$0x75316420]  ;;  %v3908_v12 = vld.sshfl [vmem:[#allocation1 + $0x18] sm:$0xff pattern:$0x75316420] }
  0x24   : > { %225 = vrot.lane.b32.xlu0 %v217_v8, %s3832_s21  ;;  %429 = vst [vmem:[#allocation1 + $0x10] ss:$2 sm:$0xff] %v3893_v4  ;;  %v3912_v13 = vld.sshfl [vmem:[#allocation1] sm:$0xff pattern:$0x75316420]  ;;  %v3550_v8 = vld [vmem:[%s4764_s1 + $0x8] sm:$0xff] }
  0x25   : > { %v3914_v14 = vld.sshfl [vmem:[#allocation1 + $0x8] sm:$0xff pattern:$0x75316420] }
  0x26   : > { %427 = vst [vmem:[#allocation1] ss:$2 sm:$0xff] %v3891_v3 }
  0x29   : > { %v558_v15 = vld.sshfl [vmem:[#allocation1 + $0x20] sm:$0xff pattern:$0x75316420] }
  0x2a   : > { %445 = vrot.lane.b32.xlu1 %v436_v10, %s3833_s22  ;;  %675 = vst [vmem:[#allocation1 + $0x20] ss:$2 sm:$0xff] %v3889_v2 }
  0x2b   : > { %v435_v16 = vld.sshfl [vmem:[#allocation1 + $0x18] sm:$0xff pattern:$0x75316420]  ;;  %v434_v17 = vld.sshfl [vmem:[#allocation1 + $0x10] sm:$0xff pattern:$0x75316420] }
  0x2c   : > { %443 = vrot.lane.b32.xlu0 %v435_v16, %s3833_s22  ;;  %441 = vrot.lane.b32.xlu2 %v434_v17, %s3833_s22  ;;  %551 = vst [vmem:[#allocation1 + $0x10] ss:$2 sm:$0xff] %v3893_v4 }
  0x2d   : > { %v433_v18 = vld.sshfl [vmem:[#allocation1 + $0x8] sm:$0xff pattern:$0x75316420]  ;;  %v432_v19 = vld.sshfl [vmem:[#allocation1] sm:$0xff pattern:$0x75316420] }
  0x2e   : > { %549 = vst [vmem:[#allocation1] ss:$2 sm:$0xff] %v3891_v3 }
  0x31   : > { %v680_v20 = vld.sshfl [vmem:[#allocation1 + $0x20] sm:$0xff pattern:$0x75316420] }
  0x32   : > { %797 = vst [vmem:[#allocation1 + $0x20] ss:$2 sm:$0xff] %v3889_v2 }
  0x33   : > { %v556_v21 = vld.sshfl [vmem:[#allocation1 + $0x10] sm:$0xff pattern:$0x75316420]  ;;  %v557_v22 = vld.sshfl [vmem:[#allocation1 + $0x18] sm:$0xff pattern:$0x75316420] }
  0x34   : > { %563 = vrot.lane.b32.xlu1 %v556_v21, %s3834_s23  ;;  %673 = vst [vmem:[#allocation1 + $0x10] ss:$2 sm:$0xff] %v3893_v4  ;;  %439 = vrot.lane.b32.xlu0 %v433_v18, %s3833_s22 }
  0x35   : > { %437 = vrot.lane.b32.xlu2 %v432_v19, %s3833_s22  ;;  %v554_v23 = vld.sshfl [vmem:[#allocation1] sm:$0xff pattern:$0x75316420]  ;;  %v555_v24 = vld.sshfl [vmem:[#allocation1 + $0x8] sm:$0xff pattern:$0x75316420] }
  0x36   : > { %671 = vst [vmem:[#allocation1] ss:$2 sm:$0xff] %v3891_v3 }
  0x39   : > { %v802_v25 = vld.sshfl [vmem:[#allocation1 + $0x20] sm:$0xff pattern:$0x75316420] }
  0x3a   : > { %919 = vst [vmem:[#allocation1 + $0x20] ss:$2 sm:$0xff] %v3889_v2 }
  0x3b   : > { %v678_v26 = vld.sshfl [vmem:[#allocation1 + $0x10] sm:$0xff pattern:$0x75316420]  ;;  %v679_v27 = vld.sshfl [vmem:[#allocation1 + $0x18] sm:$0xff pattern:$0x75316420] }
  0x3c   : > { %567 = vrot.lane.b32.xlu0 %v558_v15, %s3834_s23  ;;  %559 = vrot.lane.b32.xlu1 %v554_v23, %s3834_s23  ;;  %795 = vst [vmem:[#allocation1 + $0x10] ss:$2 sm:$0xff] %v3893_v4 }
  0x3d   : > { %565 = vrot.lane.b32.xlu2 %v557_v22, %s3834_s23  ;;  %v677_v28 = vld.sshfl [vmem:[#allocation1 + $0x8] sm:$0xff pattern:$0x75316420]  ;;  %v676_v29 = vld.sshfl [vmem:[#allocation1] sm:$0xff pattern:$0x75316420] }
  0x3e   : > { %793 = vst [vmem:[#allocation1] ss:$2 sm:$0xff] %v3891_v3 }
  0x41   : > { %v924_v30 = vld.sshfl [vmem:[#allocation1 + $0x20] sm:$0xff pattern:$0x75316420] }
  0x42   : > { %1041 = vst [vmem:[#allocation1 + $0x20] ss:$2 sm:$0xff] %v3889_v2 }
  0x43   : > { %v801_v31 = vld.sshfl [vmem:[#allocation1 + $0x18] sm:$0xff pattern:$0x75316420]  ;;  %v800_v32 = vld.sshfl [vmem:[#allocation1 + $0x10] sm:$0xff pattern:$0x75316420] }
  0x44   : > { %685 = vrot.lane.b32.xlu0 %v678_v26, %s3835_s24  ;;  %687 = vrot.lane.b32.xlu1 %v679_v27, %s3835_s24  ;;  %917 = vst [vmem:[#allocation1 + $0x10] ss:$2 sm:$0xff] %v3893_v4 }
  0x45   : > { %561 = vrot.lane.b32.xlu2 %v555_v24, %s3834_s23  ;;  %v799_v33 = vld.sshfl [vmem:[#allocation1 + $0x8] sm:$0xff pattern:$0x75316420]  ;;  %v798_v34 = vld.sshfl [vmem:[#allocation1] sm:$0xff pattern:$0x75316420] }
  0x46   : > { %915 = vst [vmem:[#allocation1] ss:$2 sm:$0xff] %v3891_v3 }
  0x49   : > { %v1046_v41 = vld.sshfl [vmem:[#allocation1 + $0x20] sm:$0xff pattern:$0x75316420] }
  0x4a   : > { %1163 = vst [vmem:[#allocation1 + $0x20] ss:$2 sm:$0xff] %v3889_v2 }
  0x4b   : > { %v922_v35 = vld.sshfl [vmem:[#allocation1 + $0x10] sm:$0xff pattern:$0x75316420]  ;;  %v923_v36 = vld.sshfl [vmem:[#allocation1 + $0x18] sm:$0xff pattern:$0x75316420] }
  0x4c   : > { %683 = vrot.lane.b32.xlu1 %v677_v28, %s3835_s24  ;;  %681 = vrot.lane.b32.xlu0 %v676_v29, %s3835_s24  ;;  %1039 = vst [vmem:[#allocation1 + $0x10] ss:$2 sm:$0xff] %v3893_v4 }
  0x4d   : > { %689 = vrot.lane.b32.xlu2 %v680_v20, %s3835_s24  ;;  %v920_v37 = vld.sshfl [vmem:[#allocation1] sm:$0xff pattern:$0x75316420]  ;;  %v921_v38 = vld.sshfl [vmem:[#allocation1 + $0x8] sm:$0xff pattern:$0x75316420] }
  0x4e   : > { %1037 = vst [vmem:[#allocation1] ss:$2 sm:$0xff] %v3891_v3 }
  0x51   : > { %v1168_v46 = vld.sshfl [vmem:[#allocation1 + $0x20] sm:$0xff pattern:$0x75316420] }
  0x52   : > { %1285 = vst [vmem:[#allocation1 + $0x20] ss:$2 sm:$0xff] %v3889_v2 }
  0x53   : > { %v1044_v39 = vld.sshfl [vmem:[#allocation1 + $0x10] sm:$0xff pattern:$0x75316420]  ;;  %v1045_v40 = vld.sshfl [vmem:[#allocation1 + $0x18] sm:$0xff pattern:$0x75316420] }
  0x54   : > { %811 = vrot.lane.b32.xlu1 %v802_v25, %s3836_s25  ;;  %809 = vrot.lane.b32.xlu0 %v801_v31, %s3836_s25  ;;  %1161 = vst [vmem:[#allocation1 + $0x10] ss:$2 sm:$0xff] %v3893_v4 }
  0x55   : > { %807 = vrot.lane.b32.xlu2 %v800_v32, %s3836_s25  ;;  %v1043_v42 = vld.sshfl [vmem:[#allocation1 + $0x8] sm:$0xff pattern:$0x75316420]  ;;  %v1042_v43 = vld.sshfl [vmem:[#allocation1] sm:$0xff pattern:$0x75316420] }
  0x56   : > { %1159 = vst [vmem:[#allocation1] ss:$2 sm:$0xff] %v3891_v3 }
  0x59   : > { %v1290_v51 = vld.sshfl [vmem:[#allocation1 + $0x20] sm:$0xff pattern:$0x75316420] }
  0x5a   : > { %1407 = vst [vmem:[#allocation1 + $0x20] ss:$2 sm:$0xff] %v3889_v2 }
  0x5b   : > { %v1167_v44 = vld.sshfl [vmem:[#allocation1 + $0x18] sm:$0xff pattern:$0x75316420]  ;;  %v1166_v45 = vld.sshfl [vmem:[#allocation1 + $0x10] sm:$0xff pattern:$0x75316420] }
  0x5c   : > { %929 = vrot.lane.b32.xlu1 %v922_v35, %s3837_s26  ;;  %805 = vrot.lane.b32.xlu0 %v799_v33, %s3836_s25  ;;  %1283 = vst [vmem:[#allocation1 + $0x10] ss:$2 sm:$0xff] %v3893_v4 }
  0x5d   : > { %803 = vrot.lane.b32.xlu2 %v798_v34, %s3836_s25  ;;  %v1165_v49 = vld.sshfl [vmem:[#allocation1 + $0x8] sm:$0xff pattern:$0x75316420]  ;;  %v1164_v50 = vld.sshfl [vmem:[#allocation1] sm:$0xff pattern:$0x75316420] }
  0x5e   : > { %1281 = vst [vmem:[#allocation1] ss:$2 sm:$0xff] %v3891_v3 }
  0x61   : > { %v3971_v56 = vld.sshfl [vmem:[#allocation1 + $0x20] sm:$0xff pattern:$0x75316420] }
  0x62   : > { %1529 = vst [vmem:[#allocation1 + $0x20] ss:$2 sm:$0xff] %v3889_v2 }
  0x63   : > { %v1288_v47 = vld.sshfl [vmem:[#allocation1 + $0x10] sm:$0xff pattern:$0x75316420]  ;;  %v1289_v48 = vld.sshfl [vmem:[#allocation1 + $0x18] sm:$0xff pattern:$0x75316420] }
  0x64   : > { %933 = vrot.lane.b32.xlu0 %v924_v30, %s3837_s26  ;;  %925 = vrot.lane.b32.xlu1 %v920_v37, %s3837_s26  ;;  %1405 = vst [vmem:[#allocation1 + $0x10] ss:$2 sm:$0xff] %v3893_v4 }
  0x65   : > { %931 = vrot.lane.b32.xlu2 %v923_v36, %s3837_s26  ;;  %v1287_v54 = vld.sshfl [vmem:[#allocation1 + $0x8] sm:$0xff pattern:$0x75316420]  ;;  %v1286_v55 = vld.sshfl [vmem:[#allocation1] sm:$0xff pattern:$0x75316420] }
  0x66   : > { %1403 = vst [vmem:[#allocation1] ss:$2 sm:$0xff] %v3891_v3 }
  0x69   : > { %v3985_v62 = vld.sshfl [vmem:[#allocation1 + $0x20] sm:$0xff pattern:$0x75316420] }
  0x6a   : > { %1651 = vst [vmem:[#allocation1 + $0x20] ss:$2 sm:$0xff] %v3889_v2 }
  0x6b   : > { %v1410_v52 = vld.sshfl [vmem:[#allocation1 + $0x10] sm:$0xff pattern:$0x75316420]  ;;  %v1411_v53 = vld.sshfl [vmem:[#allocation1 + $0x18] sm:$0xff pattern:$0x75316420] }
  0x6c   : > { %1051 = vrot.lane.b32.xlu0 %v1044_v39, %s3838_s27  ;;  %1053 = vrot.lane.b32.xlu1 %v1045_v40, %s3838_s27  ;;  %1527 = vst [vmem:[#allocation1 + $0x10] ss:$2 sm:$0xff] %v3893_v4  ;;  %v3567_v39 = vld [vmem:[%s4764_s1 + $0x10] sm:$0xff] }
  0x6d   : > { %927 = vrot.lane.b32.xlu2 %v921_v38, %s3837_s26  ;;  %v1409_v58 = vld.sshfl [vmem:[#allocation1 + $0x8] sm:$0xff pattern:$0x75316420]  ;;  %v1408_v59 = vld.sshfl [vmem:[#allocation1] sm:$0xff pattern:$0x75316420] }
  0x6e   : > { %1525 = vst [vmem:[#allocation1] ss:$2 sm:$0xff] %v3891_v3 }
  0x71   : > { %v4009_v16 = vld.sshfl [vmem:[#allocation1 + $0x20] sm:$0xff pattern:$0x75316420] }
  0x72   : > { %1773 = vst [vmem:[#allocation1 + $0x20] ss:$2 sm:$0xff] %v3889_v2 }
  0x73   : > { %v3978_v60 = vld.sshfl [vmem:[#allocation1 + $0x18] sm:$0xff pattern:$0x75316420]  ;;  %v3982_v61 = vld.sshfl [vmem:[#allocation1 + $0x10] sm:$0xff pattern:$0x75316420] }
  0x74   : > { %1049 = vrot.lane.b32.xlu1 %v1043_v42, %s3838_s27  ;;  %1047 = vrot.lane.b32.xlu0 %v1042_v43, %s3838_s27  ;;  %1649 = vst [vmem:[#allocation1 + $0x10] ss:$2 sm:$0xff] %v3893_v4 }
  0x75   : > { %1055 = vrot.lane.b32.xlu2 %v1046_v41, %s3838_s27  ;;  %v3999_v6 = vld.sshfl [vmem:[#allocation1 + $0x8] sm:$0xff pattern:$0x75316420]  ;;  %v4004_v9 = vld.sshfl [vmem:[#allocation1] sm:$0xff pattern:$0x75316420] }
  0x76   : > { %1647 = vst [vmem:[#allocation1] ss:$2 sm:$0xff] %v3891_v3 }
  0x77   : > { %v222_v57 = vpop.permute.xlu2 %221 }
  0x79   : > { %v4056_v29 = vld.sshfl [vmem:[#allocation1 + $0x20] sm:$0xff pattern:$0x75316420] }
  0x7a   : > { %1895 = vst [vmem:[#allocation1 + $0x20] ss:$2 sm:$0xff] %v3889_v2 }
  0x7b   : > { %v3993_v1 = vld.sshfl [vmem:[#allocation1 + $0x10] sm:$0xff pattern:$0x75316420]  ;;  %v3995_v5 = vld.sshfl [vmem:[#allocation1 + $0x18] sm:$0xff pattern:$0x75316420] }
  0x7c   : > { %1177 = vrot.lane.b32.xlu1 %v1168_v46, %s3839_s28  ;;  %1175 = vrot.lane.b32.xlu0 %v1167_v44, %s3839_s28  ;;  %1771 = vst [vmem:[#allocation1 + $0x10] ss:$2 sm:$0xff] %v3893_v4 }
  0x7d   : > { %1173 = vrot.lane.b32.xlu2 %v1166_v45, %s3839_s28 }
  0x81   : > { %v4090_v44 = vld.sshfl [vmem:[#allocation1 + $0x20] sm:$0xff pattern:$0x75316420] }
  0x82   : > { %2017 = vst [vmem:[#allocation1 + $0x20] ss:$2 sm:$0xff] %v3889_v2 }
  0x83   : > { %v4039_v24 = vld.sshfl [vmem:[#allocation1 + $0x18] sm:$0xff pattern:$0x75316420] }
  0x84   : > { %1295 = vrot.lane.b32.xlu1 %v1288_v47, %s3840_s29  ;;  %1171 = vrot.lane.b32.xlu0 %v1165_v49, %s3839_s28 }
  0x85   : > { %1169 = vrot.lane.b32.xlu2 %v1164_v50, %s3839_s28 }
  0x86   : > { %v3988_v63 = vpop.permute.xlu2 %441 }
  0x8c   : > { %1299 = vrot.lane.b32.xlu0 %v1290_v51, %s3840_s29  ;;  %1291 = vrot.lane.b32.xlu1 %v1286_v55, %s3840_s29  ;;  %v228_v0 = vpop.permute.xlu1 %227 }
  0x8d   : > { %1297 = vrot.lane.b32.xlu2 %v1289_v48, %s3840_s29  ;;  %v3576_v48 = vld [vmem:[%s4764_s1 + $0x18] sm:$0xff] }
  0x8e   : > { %v224_v7 = vpop.permute.xlu0 %223 }
  0x8f   : > { %v231_v10 = vsel %vm229_vm0, %v222_v57, %v224_v7  ;;  %v438_v15 = vpop.permute.xlu2 %437 }
  0x90   : > { %3553 = vmatpush.msk.msra.mxu1 %vm238_vm1, %v231_v10  ;;  %v3594_v10 = vld [vmem:[%s4764_s1 + $0x28] sm:$0xff] }
  0x91   : > { %3554 = vmatmul.msk.f32.vlgmr.msra.gmra.mxu1 %vm234_vm2, %v3550_v8 }
  0x92   : > { %3561 = vmatpush.msk.msrb.mxu1 %vm238_vm1, %v3914_v14  ;;  %v203_v14 = vld [vmem:[%s4764_s1] sm:$0xff] }
  0x94   : > { %1417 = vrot.lane.b32.xlu0 %v1410_v52, %s3841_s6  ;;  %1419 = vrot.lane.b32.xlu1 %v1411_v53, %s3841_s6  ;;  %v220_v17 = vpop.permute.xlu1 %219 }
  0x95   : > { %v230_v18 = vsel %vm229_vm0, %v220_v17, %v222_v57  ;;  %1293 = vrot.lane.b32.xlu2 %v1287_v54, %s3840_s29 }
  0x96   : > { %v226_v19 = vpop.permute.xlu0 %225  ;;  %3551 = vmatpush.msk.msra.mxu0 %vm238_vm1, %v230_v18 }
  0x97   : > { %v232_v20 = vsel %vm229_vm0, %v224_v7, %v226_v19  ;;  %v233_v21 = vsel %vm229_vm0, %v226_v19, %v228_v0  ;;  %v4020_v22 = vpop.permute.xlu2 %565  ;;  %3552 = vmatmul.msk.f32.vlgmr.msra.gmra.mxu0 %vm234_vm2, %v3550_v8 }
  0x98   : > { %3559 = vmatpush.msk.msrb.mxu0 %vm238_vm1, %v3912_v13  ;;  %3555 = vmatpush.msk.msra.mxu2 %vm238_vm1, %v232_v20  ;;  %v4037_v13 = vld.sshfl [vmem:[#allocation1 + $0x10] sm:$0xff pattern:$0x75316420] }
  0x99   : > { %3557 = vmatpush.msk.msra.mxu3 %vm238_vm1, %v233_v21  ;;  %3556 = vmatmul.msk.f32.vlgmr.msra.gmra.mxu2 %vm234_vm2, %v3550_v8  ;;  %1893 = vst [vmem:[#allocation1 + $0x10] ss:$2 sm:$0xff] %v3893_v4 }
  0x9a   : > { %3563 = vmatpush.msk.msrb.mxu2 %vm238_vm1, %v3906_v11  ;;  %3558 = vmatmul.msk.f32.vlgmr.msra.gmra.mxu3 %vm234_vm2, %v3550_v8  ;;  %v4041_v11 = vld.sshfl [vmem:[#allocation1 + $0x8] sm:$0xff pattern:$0x75316420] }
  0x9b   : > { %3565 = vmatpush.msk.msrb.mxu3 %vm238_vm1, %v3908_v12  ;;  %3562 = vmatmul.msk.f32.vlgmr.msrb.gmra.mxu1 %vm234_vm2, %v203_v14  ;;  %v1652_v12 = vld.sshfl [vmem:[#allocation1] sm:$0xff pattern:$0x75316420] }
  0x9c   : > { %1415 = vrot.lane.b32.xlu1 %v1409_v58, %s3841_s6  ;;  %1413 = vrot.lane.b32.xlu0 %v1408_v59, %s3841_s6  ;;  %v446_v23 = vpop.permute.xlu1 %445  ;;  %1769 = vst [vmem:[#allocation1] ss:$2 sm:$0xff] %v3891_v3  ;;  %v3585_v58 = vld [vmem:[%s4764_s1 + $0x20] sm:$0xff] }
  0x9d   : > { %1421 = vrot.lane.b32.xlu2 %v3971_v56, %s3841_s6  ;;  %v4130_v59 = vld.sshfl [vmem:[#allocation1 + $0x20] sm:$0xff pattern:$0x75316420] }
  0x9e   : > { %v444_v25 = vpop.permute.xlu0 %443  ;;  %2139 = vst [vmem:[#allocation1 + $0x20] ss:$2 sm:$0xff] %v3889_v2 }
  0x9f   : > { %v450_v26 = vsel %vm447_vm3, %v3988_v63, %v444_v25  ;;  %v451_v27 = vsel %vm447_vm3, %v444_v25, %v446_v23  ;;  %v562_v28 = vpop.permute.xlu2 %561  ;;  %3560 = vmatmul.msk.f32.vlgmr.msrb.gmra.mxu0 %vm234_vm2, %v203_v14 }
  0xa0   : > { %3572 = vmatpush.msk.msra.mxu2 %vm238_vm1, %v450_v26  ;;  %3574 = vmatpush.msk.msra.mxu3 %vm238_vm1, %v451_v27  ;;  %v4085_v40 = vld.sshfl [vmem:[#allocation1 + $0x18] sm:$0xff pattern:$0x75316420]  ;;  %v4088_v41 = vld.sshfl [vmem:[#allocation1 + $0x10] sm:$0xff pattern:$0x75316420] }
  0xa1   : > { %3564 = vmatmul.msk.f32.vlgmr.msrb.gmra.mxu2 %vm234_vm2, %v203_v14  ;;  %2015 = vst [vmem:[#allocation1 + $0x10] ss:$2 sm:$0xff] %v3893_v4  ;;  %v3603_v26 = vld [vmem:[%s4764_s1 + $0x30] sm:$0xff] }
  0xa2   : > { %3566 = vmatmul.msk.f32.vlgmr.msrb.gmra.mxu3 %vm234_vm2, %v203_v14 }
  0xa3   : > { %v4059_v30 = vld.sshfl [vmem:[#allocation1 + $0x8] sm:$0xff pattern:$0x75316420]  ;;  %v4061_v31 = vld.sshfl [vmem:[#allocation1] sm:$0xff pattern:$0x75316420] }
  0xa4   : > { %1543 = vrot.lane.b32.xlu1 %v3985_v62, %s3842_s9  ;;  %1541 = vrot.lane.b32.xlu0 %v3978_v60, %s3842_s9  ;;  %1891 = vst [vmem:[#allocation1] ss:$2 sm:$0xff] %v3891_v3 }
  0xa5   : > { %1539 = vrot.lane.b32.xlu2 %v3982_v61, %s3842_s9  ;;  %v4172_v18 = vld.sshfl [vmem:[#allocation1 + $0x20] sm:$0xff pattern:$0x75316420] }
  0xa6   : > { %v564_v32 = vpop.permute.xlu1 %563  ;;  %v440_v33 = vpop.permute.xlu0 %439  ;;  %2261 = vst [vmem:[#allocation1 + $0x20] ss:$2 sm:$0xff] %v3889_v2 }
  0xa7   : > { %v572_v34 = vsel %vm569_vm4, %v564_v32, %v4020_v22  ;;  %v448_v35 = vsel %vm447_vm3, %v438_v15, %v440_v33  ;;  %v449_v36 = vsel %vm447_vm3, %v440_v33, %v3988_v63  ;;  %v571_v37 = vsel %vm569_vm4, %v562_v28, %v564_v32  ;;  %v690_v38 = vpop.permute.xlu2 %689 }
  0xa8   : > { %3568 = vmatpush.msk.msra.mxu0 %vm238_vm1, %v448_v35  ;;  %3570 = vmatpush.msk.msra.mxu1 %vm238_vm1, %v449_v36  ;;  %v4117_v51 = vld.sshfl [vmem:[#allocation1 + $0x10] sm:$0xff pattern:$0x75316420]  ;;  %v4119_v52 = vld.sshfl [vmem:[#allocation1 + $0x18] sm:$0xff pattern:$0x75316420] }
  0xa9   : > { %3581 = vmatpush.msk.msrb.mxu2 %vm238_vm1, %v572_v34  ;;  %3569 = vmatmul.msk.f32.vlgmr.msra.gmra.mxu0 %vm234_vm2, %v3567_v39  ;;  %2137 = vst [vmem:[#allocation1 + $0x10] ss:$2 sm:$0xff] %v3893_v4 }
  0xaa   : > { %3579 = vmatpush.msk.msrb.mxu1 %vm238_vm1, %v571_v37  ;;  %3573 = vmatmul.msk.f32.vlgmr.msra.gmra.mxu2 %vm234_vm2, %v3567_v39 }
  0xab   : > { %3575 = vmatmul.msk.f32.vlgmr.msra.gmra.mxu3 %vm234_vm2, %v3567_v39  ;;  %3571 = vmatmul.msk.f32.vlgmr.msra.gmra.mxu1 %vm234_vm2, %v3567_v39  ;;  %v4111_v49 = vld.sshfl [vmem:[#allocation1 + $0x8] sm:$0xff pattern:$0x75316420]  ;;  %v4113_v50 = vld.sshfl [vmem:[#allocation1] sm:$0xff pattern:$0x75316420] }
  0xac   : > { %1661 = vrot.lane.b32.xlu1 %v3993_v1, %s3843_s12  ;;  %1537 = vrot.lane.b32.xlu0 %v3999_v6, %s3842_s9  ;;  %2013 = vst [vmem:[#allocation1] ss:$2 sm:$0xff] %v3891_v3 }
  0xad   : > { %1535 = vrot.lane.b32.xlu2 %v4004_v9, %s3842_s9 }
  0xae   : > { %v568_v42 = vpop.permute.xlu0 %567  ;;  %v560_v43 = vpop.permute.xlu1 %559 }
  0xaf   : > { %v573_v45 = vsel %vm569_vm4, %v4020_v22, %v568_v42  ;;  %v570_v46 = vsel %vm569_vm4, %v560_v43, %v562_v28  ;;  %v4096_v47 = vpop.permute.xlu2 %807 }
  0xb0   : > { %3577 = vmatpush.msk.msrb.mxu0 %vm238_vm1, %v570_v46  ;;  %3583 = vmatpush.msk.msrb.mxu3 %vm238_vm1, %v573_v45  ;;  %v4147_v1 = vld.sshfl [vmem:[#allocation1 + $0x10] sm:$0xff pattern:$0x75316420] }
  0xb1   : > { %3578 = vmatmul.msk.f32.vlgmr.msrb.gmra.mxu0 %vm234_vm2, %v3576_v48 }
  0xb2   : > { %3582 = vmatmul.msk.f32.vlgmr.msrb.gmra.mxu2 %vm234_vm2, %v3576_v48 }
  0xb3   : > { %3584 = vmatmul.msk.f32.vlgmr.msrb.gmra.mxu3 %vm234_vm2, %v3576_v48  ;;  %3580 = vmatmul.msk.f32.vlgmr.msrb.gmra.mxu1 %vm234_vm2, %v3576_v48  ;;  %v4153_v6 = vld.sshfl [vmem:[#allocation1 + $0x8] sm:$0xff pattern:$0x75316420]  ;;  %v4156_v7 = vld.sshfl [vmem:[#allocation1] sm:$0xff pattern:$0x75316420] }
  0xb4   : > { %1665 = vrot.lane.b32.xlu0 %v4009_v16, %s3843_s12  ;;  %1657 = vrot.lane.b32.xlu1 %v1652_v12, %s3843_s12  ;;  %2135 = vst [vmem:[#allocation1] ss:$2 sm:$0xff] %v3891_v3 }
  0xb5   : > { %1663 = vrot.lane.b32.xlu2 %v3995_v5, %s3843_s12  ;;  %v4151_v5 = vld.sshfl [vmem:[#allocation1 + $0x18] sm:$0xff pattern:$0x75316420] }
  0xb6   : > { %v686_v53 = vpop.permute.xlu0 %685  ;;  %v688_v54 = vpop.permute.xlu1 %687  ;;  %2259 = vst [vmem:[#allocation1 + $0x10] ss:$2 sm:$0xff] %v3893_v4 }
  0xb7   : > { %v694_v55 = vsel %vm691_vm5, %v686_v53, %v688_v54  ;;  %v695_v56 = vsel %vm691_vm5, %v688_v54, %v690_v38  ;;  %v804_v57 = vpop.permute.xlu2 %803 }
  0xb8   : > { %3590 = vmatpush.msk.msra.mxu2 %vm238_vm1, %v694_v55  ;;  %3592 = vmatpush.msk.msra.mxu3 %vm238_vm1, %v695_v56 }
  0xba   : > { %3591 = vmatmul.msk.f32.vlgmr.msra.gmra.mxu2 %vm234_vm2, %v3585_v58 }
  0xbb   : > { %3593 = vmatmul.msk.f32.vlgmr.msra.gmra.mxu3 %vm234_vm2, %v3585_v58  ;;  %v4177_v20 = vld.sshfl [vmem:[#allocation1 + $0x8] sm:$0xff pattern:$0x75316420]  ;;  %v4179_v21 = vld.sshfl [vmem:[#allocation1] sm:$0xff pattern:$0x75316420] }
  0xbc   : > { %1783 = vrot.lane.b32.xlu0 %v4037_v13, %s3844_s19  ;;  %1785 = vrot.lane.b32.xlu1 %v4039_v24, %s3844_s19  ;;  %2257 = vst [vmem:[#allocation1] ss:$2 sm:$0xff] %v3891_v3 }
  0xbd   : > { %1659 = vrot.lane.b32.xlu2 %v4041_v11, %s3843_s12  ;;  %v4174_v19 = vld.sshfl [vmem:[#allocation1 + $0x18] sm:$0xff pattern:$0x75316420]  ;;  %v4182_v13 = vld.sshfl [vmem:[#allocation1 + $0x10] sm:$0xff pattern:$0x75316420] }
  0xbe   : > { %v684_v60 = vpop.permute.xlu1 %683  ;;  %v682_v61 = vpop.permute.xlu0 %681  ;;  %2381 = vst [vmem:[#allocation1 + $0x10] ss:$2 sm:$0xff] %v3893_v4 }
  0xbf   : > { %v693_v62 = vsel %vm691_vm5, %v684_v60, %v686_v53  ;;  %v692_v63 = vsel %vm691_vm5, %v682_v61, %v684_v60  ;;  %v4141_v0 = vpop.permute.xlu2 %931 }
  0xc0   : > { %3586 = vmatpush.msk.msra.mxu0 %vm238_vm1, %v692_v63  ;;  %3588 = vmatpush.msk.msra.mxu1 %vm238_vm1, %v693_v62 }
  0xc1   : > { %3589 = vmatmul.msk.f32.vlgmr.msra.gmra.mxu1 %vm234_vm2, %v3585_v58  ;;  %3587 = vmatmul.msk.f32.vlgmr.msra.gmra.mxu0 %vm234_vm2, %v3585_v58 }
  0xc3   : > { %v4206_v27 = vld.sshfl [vmem:[#allocation1 + $0x8] sm:$0xff pattern:$0x75316420]  ;;  %v4208_v28 = vld.sshfl [vmem:[#allocation1] sm:$0xff pattern:$0x75316420] }
  0xc4   : > { %1781 = vrot.lane.b32.xlu1 %v4059_v30, %s3844_s19  ;;  %1779 = vrot.lane.b32.xlu0 %v4061_v31, %s3844_s19  ;;  %v4210_v31 = vld.sshfl [vmem:[#allocation1 + $0x20] sm:$0xff pattern:$0x75316420]  ;;  %2379 = vst [vmem:[#allocation1] ss:$2 sm:$0xff] %v3891_v3 }
  0xc5   : > { %1787 = vrot.lane.b32.xlu2 %v4056_v29, %s3844_s19  ;;  %2383 = vst [vmem:[#allocation1 + $0x20] ss:$2 sm:$0xff] %v3889_v2  ;;  %v4219_v35 = vld.sshfl [vmem:[#allocation1 + $0x10] sm:$0xff pattern:$0x75316420] }
  0xc6   : > { %v812_v8 = vpop.permute.xlu1 %811  ;;  %v810_v9 = vpop.permute.xlu0 %809  ;;  %v4223_v36 = vld.sshfl [vmem:[#allocation1 + $0x18] sm:$0xff pattern:$0x75316420] }
  0xc7   : > { %v816_v15 = vsel %vm813_vm6, %v4096_v47, %v810_v9  ;;  %v817_v16 = vsel %vm813_vm6, %v810_v9, %v812_v8  ;;  %v928_v17 = vpop.permute.xlu2 %927  ;;  %2487 = vst [vmem:[#allocation1 + $0x10] ss:$2 sm:$0xff] %v3893_v4 }
  0xc8   : > { %3599 = vmatpush.msk.msrb.mxu2 %vm238_vm1, %v816_v15  ;;  %3601 = vmatpush.msk.msrb.mxu3 %vm238_vm1, %v817_v16  ;;  %v3630_v16 = vld [vmem:[%s4764_s1 + $0x48] sm:$0xff] }
  0xc9   : > { %3600 = vmatmul.msk.f32.vlgmr.msrb.gmra.mxu2 %vm234_vm2, %v3594_v10  ;;  %3602 = vmatmul.msk.f32.vlgmr.msrb.gmra.mxu3 %vm234_vm2, %v3594_v10 }
  0xcb   : > { %v4235_v37 = vld.sshfl [vmem:[#allocation1 + $0x8] sm:$0xff pattern:$0x75316420] }
  0xcc   : > { %1909 = vrot.lane.b32.xlu1 %v4090_v44, %s3845_s30  ;;  %1907 = vrot.lane.b32.xlu0 %v4085_v40, %s3845_s30  ;;  %v4237_v40 = vld.sshfl [vmem:[#allocation1 + $0x20] sm:$0xff pattern:$0x75316420]  ;;  %2485 = vst [vmem:[#allocation1] ss:$2 sm:$0xff] %v3891_v3 }
  0xcd   : > { %1905 = vrot.lane.b32.xlu2 %v4088_v41, %s3845_s30  ;;  %v3612_v41 = vld [vmem:[%s4764_s1 + $0x38] sm:$0xff]  ;;  %2489 = vst [vmem:[#allocation1 + $0x20] ss:$2 sm:$0xff] %v3889_v2 }
  0xce   : > { %v930_v22 = vpop.permute.xlu1 %929  ;;  %v806_v14 = vpop.permute.xlu0 %805  ;;  %v4248_v45 = vld.sshfl [vmem:[#allocation1 + $0x10] sm:$0xff pattern:$0x75316420]  ;;  %v4250_v46 = vld.sshfl [vmem:[#allocation1 + $0x18] sm:$0xff pattern:$0x75316420] }
  0xcf   : > { %v938_v23 = vsel %vm935_vm7, %v930_v22, %v4141_v0  ;;  %v814_v24 = vsel %vm813_vm6, %v804_v57, %v806_v14  ;;  %v815_v11 = vsel %vm813_vm6, %v806_v14, %v4096_v47  ;;  %v937_v12 = vsel %vm935_vm7, %v928_v17, %v930_v22  ;;  %v1056_v25 = vpop.permute.xlu2 %1055  ;;  %2608 = vst [vmem:[#allocation1 + $0x10] ss:$2 sm:$0xff] %v3893_v4  ;;  %v3621_v57 = vld [vmem:[%s4764_s1 + $0x40] sm:$0xff] }
  0xd0   : > { %3595 = vmatpush.msk.msrb.mxu0 %vm238_vm1, %v814_v24  ;;  %3597 = vmatpush.msk.msrb.mxu1 %vm238_vm1, %v815_v11 }
  0xd1   : > { %3608 = vmatpush.msk.msra.mxu2 %vm238_vm1, %v938_v23  ;;  %3596 = vmatmul.msk.f32.vlgmr.msrb.gmra.mxu0 %vm234_vm2, %v3594_v10 }
  0xd2   : > { %3606 = vmatpush.msk.msra.mxu1 %vm238_vm1, %v937_v12  ;;  %3609 = vmatmul.msk.f32.vlgmr.msra.gmra.mxu2 %vm234_vm2, %v3603_v26 }
  0xd3   : > { %3598 = vmatmul.msk.f32.vlgmr.msrb.gmra.mxu1 %vm234_vm2, %v3594_v10  ;;  %v4259_v47 = vld.sshfl [vmem:[#allocation1 + $0x8] sm:$0xff pattern:$0x75316420] }
  0xd4   : > { %2027 = vrot.lane.b32.xlu1 %v4117_v51, %s3846_s7  ;;  %1903 = vrot.lane.b32.xlu0 %v4111_v49, %s3845_s30  ;;  %2606 = vst [vmem:[#allocation1] ss:$2 sm:$0xff] %v3891_v3  ;;  %v4266_v54 = vld.sshfl [vmem:[#allocation1 + $0x20] sm:$0xff pattern:$0x75316420] }
  0xd5   : > { %1901 = vrot.lane.b32.xlu2 %v4113_v50, %s3845_s30  ;;  %v4261_v50 = vld.sshfl [vmem:[#allocation1 + $0x28] sm:$0xff pattern:$0x75316420] }
  0xd6   : > { %v934_v29 = vpop.permute.xlu0 %933  ;;  %v926_v30 = vpop.permute.xlu1 %925  ;;  %2610 = vst [vmem:[#allocation1 + $0x20] ss:$2 sm:$0xff] %v3889_v2  ;;  %v4284_v61 = vld.sshfl [vmem:[#allocation1 + $0x18] sm:$0xff pattern:$0x75316420] }
  0xd7   : > { %v939_v32 = vsel %vm935_vm7, %v4141_v0, %v934_v29  ;;  %v936_v33 = vsel %vm935_vm7, %v926_v30, %v928_v17  ;;  %v4216_v34 = vpop.permute.xlu2 %1173  ;;  %v4286_v62 = vld.sshfl [vmem:[#allocation1 + $0x10] sm:$0xff pattern:$0x75316420] }
  0xd8   : > { %3604 = vmatpush.msk.msra.mxu0 %vm238_vm1, %v936_v33  ;;  %3610 = vmatpush.msk.msra.mxu3 %vm238_vm1, %v939_v32  ;;  %2729 = vst [vmem:[#allocation1 + $0x10] ss:$2 sm:$0xff] %v3893_v4 }
  0xd9   : > { %3611 = vmatmul.msk.f32.vlgmr.msra.gmra.mxu3 %vm234_vm2, %v3603_v26  ;;  %3605 = vmatmul.msk.f32.vlgmr.msra.gmra.mxu0 %vm234_vm2, %v3603_v26 }
  0xdb   : > { %3607 = vmatmul.msk.f32.vlgmr.msra.gmra.mxu1 %vm234_vm2, %v3603_v26  ;;  %v4293_v63 = vld.sshfl [vmem:[#allocation1 + $0x8] sm:$0xff pattern:$0x75316420] }
  0xdc   : > { %2031 = vrot.lane.b32.xlu0 %v4130_v59, %s3846_s7  ;;  %2023 = vrot.lane.b32.xlu1 %v4156_v7, %s3846_s7  ;;  %2727 = vst [vmem:[#allocation1] ss:$2 sm:$0xff] %v3891_v3 }
  0xdd   : > { %2029 = vrot.lane.b32.xlu2 %v4119_v52, %s3846_s7  ;;  %v4295_v0 = vld.sshfl [vmem:[#allocation1 + $0x28] sm:$0xff pattern:$0x75316420] }
  0xde   : > { %v1052_v38 = vpop.permute.xlu0 %1051  ;;  %v1054_v39 = vpop.permute.xlu1 %1053 }
  0xdf   : > { %v1060_v42 = vsel %vm1057_vm8, %v1052_v38, %v1054_v39  ;;  %v1061_v43 = vsel %vm1057_vm8, %v1054_v39, %v1056_v25  ;;  %v1170_v44 = vpop.permute.xlu2 %1169  ;;  %v4330_v23 = vld.sshfl [vmem:[#allocation1 + $0x18] sm:$0xff pattern:$0x75316420]  ;;  %v3639_v25 = vld [vmem:[%s4764_s1 + $0x50] sm:$0xff] }
  0xe0   : > { %3617 = vmatpush.msk.msrb.mxu2 %vm238_vm1, %v1060_v42  ;;  %3619 = vmatpush.msk.msrb.mxu3 %vm238_vm1, %v1061_v43 }
  0xe1   : > { %3618 = vmatmul.msk.f32.vlgmr.msrb.gmra.mxu2 %vm234_vm2, %v3612_v41  ;;  %3620 = vmatmul.msk.f32.vlgmr.msrb.gmra.mxu3 %vm234_vm2, %v3612_v41 }
  0xe3   : > { %v4344_v24 = vld.sshfl [vmem:[#allocation1 + $0x8] sm:$0xff pattern:$0x75316420] }
  0xe4   : > { %2149 = vrot.lane.b32.xlu0 %v4147_v1, %s3847_s10  ;;  %2151 = vrot.lane.b32.xlu1 %v4151_v5, %s3847_s10  ;;  %v2614_v1 = vld.sshfl [vmem:[#allocation1 + $0x20] sm:$0xff pattern:$0x75316420]  ;;  %2848 = vst [vmem:[#allocation1] ss:$2 sm:$0xff] %v3891_v3 }
  0xe5   : > { %2025 = vrot.lane.b32.xlu2 %v4153_v6, %s3846_s7  ;;  %2731 = vst [vmem:[#allocation1 + $0x20] ss:$2 sm:$0xff] %v3889_v2 }
  0xe6   : > { %v1050_v48 = vpop.permute.xlu1 %1049  ;;  %v1048_v49 = vpop.permute.xlu0 %1047 }
  0xe7   : > { %v1059_v51 = vsel %vm1057_vm8, %v1050_v48, %v1052_v38  ;;  %v1058_v52 = vsel %vm1057_vm8, %v1048_v49, %v1050_v48  ;;  %v1298_v53 = vpop.permute.xlu2 %1297 }
  0xe8   : > { %3613 = vmatpush.msk.msrb.mxu0 %vm238_vm1, %v1058_v52  ;;  %3615 = vmatpush.msk.msrb.mxu1 %vm238_vm1, %v1059_v51 }
  0xe9   : > { %3616 = vmatmul.msk.f32.vlgmr.msrb.gmra.mxu1 %vm234_vm2, %v3612_v41  ;;  %3614 = vmatmul.msk.f32.vlgmr.msrb.gmra.mxu0 %vm234_vm2, %v3612_v41 }
  0xeb   : > { %v4368_v32 = vld.sshfl [vmem:[#allocation1 + $0x8] sm:$0xff pattern:$0x75316420] }
  0xec   : > { %2147 = vrot.lane.b32.xlu1 %v4177_v20, %s3847_s10  ;;  %2145 = vrot.lane.b32.xlu0 %v4179_v21, %s3847_s10  ;;  %v4319_v17 = vld.sshfl [vmem:[#allocation1 + $0x28] sm:$0xff pattern:$0x75316420]  ;;  %v4324_v21 = vld.sshfl [vmem:[#allocation1 + $0x10] sm:$0xff pattern:$0x75316420] }
  0xed   : > { %2153 = vrot.lane.b32.xlu2 %v4172_v18, %s3847_s10  ;;  %v4321_v18 = vld.sshfl [vmem:[#allocation1 + $0x20] sm:$0xff pattern:$0x75316420]  ;;  %2850 = vst [vmem:[#allocation1 + $0x10] ss:$2 sm:$0xff] %v3893_v4 }
  0xee   : > { %v1178_v55 = vpop.permute.xlu1 %1177  ;;  %v1176_v56 = vpop.permute.xlu0 %1175  ;;  %2852 = vst [vmem:[#allocation1 + $0x20] ss:$2 sm:$0xff] %v3889_v2 }
  0xef   : > { %v1182_v58 = vsel %vm1179_vm9, %v4216_v34, %v1176_v56  ;;  %v1183_v59 = vsel %vm1179_vm9, %v1176_v56, %v1178_v55  ;;  %v1294_v60 = vpop.permute.xlu2 %1293  ;;  %2969 = vst [vmem:[#allocation1] ss:$2 sm:$0xff] %v3891_v3 }
  0xf0   : > { %3626 = vmatpush.msk.msra.mxu2 %vm238_vm1, %v1182_v58  ;;  %3628 = vmatpush.msk.msra.mxu3 %vm238_vm1, %v1183_v59  ;;  %v3657_v59 = vld [vmem:[%s4764_s1 + $0x60] sm:$0xff] }
  0xf1   : > { %3627 = vmatmul.msk.f32.vlgmr.msra.gmra.mxu2 %vm234_vm2, %v3621_v57  ;;  %3629 = vmatmul.msk.f32.vlgmr.msra.gmra.mxu3 %vm234_vm2, %v3621_v57 }
  0xf4   : > { %2275 = vrot.lane.b32.xlu1 %v4210_v31, %s3848_s13  ;;  %2273 = vrot.lane.b32.xlu0 %v4174_v19, %s3848_s13  ;;  %v4352_v29 = vld.sshfl [vmem:[#allocation1 + $0x10] sm:$0xff pattern:$0x75316420]  ;;  %v4354_v30 = vld.sshfl [vmem:[#allocation1 + $0x18] sm:$0xff pattern:$0x75316420] }
  0xf5   : > { %2271 = vrot.lane.b32.xlu2 %v4182_v13, %s3848_s13  ;;  %2971 = vst [vmem:[#allocation1 + $0x10] ss:$2 sm:$0xff] %v3893_v4  ;;  %v4364_v31 = vld.sshfl [vmem:[#allocation1 + $0x28] sm:$0xff pattern:$0x75316420] }
  0xf6   : > { %v1296_v5 = vpop.permute.xlu1 %1295  ;;  %v1172_v6 = vpop.permute.xlu0 %1171  ;;  %v4370_v33 = vld.sshfl [vmem:[#allocation1 + $0x20] sm:$0xff pattern:$0x75316420]  ;;  %v4407_v52 = vld.sshfl [vmem:[#allocation1 + $0x8] sm:$0xff pattern:$0x75316420] }
  0xf7   : > { %v1304_v7 = vsel %vm1301_vm10, %v1296_v5, %v1298_v53  ;;  %v1180_v8 = vsel %vm1179_vm9, %v1170_v44, %v1172_v6  ;;  %v1181_v9 = vsel %vm1179_vm9, %v1172_v6, %v4216_v34  ;;  %v1303_v10 = vsel %vm1301_vm10, %v1294_v60, %v1296_v5  ;;  %v1422_v15 = vpop.permute.xlu2 %1421  ;;  %2973 = vst [vmem:[#allocation1 + $0x20] ss:$2 sm:$0xff] %v3889_v2 }
  0xf8   : > { %3622 = vmatpush.msk.msra.mxu0 %vm238_vm1, %v1180_v8  ;;  %3624 = vmatpush.msk.msra.mxu1 %vm238_vm1, %v1181_v9  ;;  %3090 = vst [vmem:[#allocation1] ss:$2 sm:$0xff] %v3891_v3 }
  0xf9   : > { %3635 = vmatpush.msk.msrb.mxu2 %vm238_vm1, %v1304_v7  ;;  %3623 = vmatmul.msk.f32.vlgmr.msra.gmra.mxu0 %vm234_vm2, %v3621_v57 }
  0xfa   : > { %3633 = vmatpush.msk.msrb.mxu1 %vm238_vm1, %v1303_v10  ;;  %3636 = vmatmul.msk.f32.vlgmr.msrb.gmra.mxu2 %vm234_vm2, %v3630_v16 }
  0xfb   : > { %3625 = vmatmul.msk.f32.vlgmr.msra.gmra.mxu1 %vm234_vm2, %v3621_v57 }
  0xfc   : > { %2499 = vrot.lane.b32.xlu1 %v4250_v46, %s3832_s21  ;;  %2269 = vrot.lane.b32.xlu0 %v4206_v27, %s3848_s13  ;;  %v4396_v49 = vld.sshfl [vmem:[#allocation1 + $0x18] sm:$0xff pattern:$0x75316420] }
  0xfd   : > { %2267 = vrot.lane.b32.xlu2 %v4208_v28, %s3848_s13 }
  0xfe   : > { %v1300_v19 = vpop.permute.xlu0 %1299  ;;  %v1292_v20 = vpop.permute.xlu1 %1291  ;;  %v4405_v51 = vld.sshfl [vmem:[#allocation1 + $0x20] sm:$0xff pattern:$0x75316420] }
  0xff   : > { %v1305_v22 = vsel %vm1301_vm10, %v1298_v53, %v1300_v19  ;;  %v1302_v14 = vsel %vm1301_vm10, %v1292_v20, %v1294_v60  ;;  %v4328_v13 = vpop.permute.xlu2 %1539  ;;  %v4412_v53 = vld.sshfl [vmem:[#allocation1 + $0x28] sm:$0xff pattern:$0x75316420]  ;;  %vm2033_vm10 = vcmask 392192  }
 0x100   : > { %3631 = vmatpush.msk.msrb.mxu0 %vm238_vm1, %v1302_v14  ;;  %3637 = vmatpush.msk.msrb.mxu3 %vm238_vm1, %v1305_v22  ;;  %3094 = vst [vmem:[#allocation1 + $0x20] ss:$2 sm:$0xff] %v3889_v2  ;;  %v4467_v20 = vld.sshfl [vmem:[#allocation1 + $0x8] sm:$0xff pattern:$0x75316420] }
 0x101   : > { %3638 = vmatmul.msk.f32.vlgmr.msrb.gmra.mxu3 %vm234_vm2, %v3630_v16  ;;  %3632 = vmatmul.msk.f32.vlgmr.msrb.gmra.mxu0 %vm234_vm2, %v3630_v16  ;;  %v3666_v14 = vld [vmem:[%s4764_s1 + $0x68] sm:$0xff]  ;;  %3211 = vst [vmem:[#allocation1] ss:$2 sm:$0xff] %v3891_v3 }
 0x103   : > { %3634 = vmatmul.msk.f32.vlgmr.msrb.gmra.mxu1 %vm234_vm2, %v3630_v16 }
 0x104   : > { %2503 = vrot.lane.b32.xlu0 %v4261_v50, %s3832_s21  ;;  %2495 = vrot.lane.b32.xlu1 %v4259_v47, %s3832_s21  ;;  %v4398_v50 = vld.sshfl [vmem:[#allocation1 + $0x10] sm:$0xff pattern:$0x75316420] }
 0x105   : > { %2501 = vrot.lane.b32.xlu2 %v4266_v54, %s3832_s21  ;;  %3092 = vst [vmem:[#allocation1 + $0x10] ss:$2 sm:$0xff] %v3893_v4 }
 0x106   : > { %v1418_v11 = vpop.permute.xlu0 %1417  ;;  %v1420_v12 = vpop.permute.xlu1 %1419 }
 0x107   : > { %v1426_v26 = vsel %vm1423_vm11, %v1418_v11, %v1420_v12  ;;  %v1427_v27 = vsel %vm1423_vm11, %v1420_v12, %v1422_v15  ;;  %v1536_v28 = vpop.permute.xlu2 %1535 }
 0x108   : > { %3644 = vmatpush.msk.msra.mxu2 %vm238_vm1, %v1426_v26  ;;  %3646 = vmatpush.msk.msra.mxu3 %vm238_vm1, %v1427_v27 }
 0x109   : > { %3645 = vmatmul.msk.f32.vlgmr.msra.gmra.mxu2 %vm234_vm2, %v3639_v25  ;;  %3647 = vmatmul.msk.f32.vlgmr.msra.gmra.mxu3 %vm234_vm2, %v3639_v25 }
 0x10c   : > { %2620 = vrot.lane.b32.xlu0 %v4284_v61, %s3833_s22  ;;  %2622 = vrot.lane.b32.xlu1 %v2614_v1, %s3833_s22  ;;  %v4442_v1 = vld.sshfl [vmem:[#allocation1 + $0x20] sm:$0xff pattern:$0x75316420]  ;;  %v4447_v8 = vld.sshfl [vmem:[#allocation1 + $0x10] sm:$0xff pattern:$0x75316420] }
 0x10d   : > { %2497 = vrot.lane.b32.xlu2 %v4248_v45, %s3832_s21  ;;  %v3648_v45 = vld [vmem:[%s4764_s1 + $0x58] sm:$0xff] }
 0x10e   : > { %v1416_v34 = vpop.permute.xlu1 %1415  ;;  %v1414_v38 = vpop.permute.xlu0 %1413 }
 0x10f   : > { %v1425_v39 = vsel %vm1423_vm11, %v1416_v34, %v1418_v11  ;;  %v1424_v41 = vsel %vm1423_vm11, %v1414_v38, %v1416_v34  ;;  %v1664_v42 = vpop.permute.xlu2 %1663  ;;  %vm2155_vm11 = vcmask 384000  }
 0x110   : > { %3640 = vmatpush.msk.msra.mxu0 %vm238_vm1, %v1424_v41  ;;  %3642 = vmatpush.msk.msra.mxu1 %vm238_vm1, %v1425_v39 }
 0x111   : > { %3641 = vmatmul.msk.f32.vlgmr.msra.gmra.mxu0 %vm234_vm2, %v3639_v25  ;;  %3643 = vmatmul.msk.f32.vlgmr.msra.gmra.mxu1 %vm234_vm2, %v3639_v25 }
 0x114   : > { %2618 = vrot.lane.b32.xlu1 %v4286_v62, %s3833_s22  ;;  %2616 = vrot.lane.b32.xlu0 %v4293_v63, %s3833_s22  ;;  %v4436_v63 = vpop.f32.mrf.mxu1  ;;  %v4444_v5 = vpop.f32.mrf.mxu0 }
 0x115   : > { %2624 = vrot.lane.b32.xlu2 %v4295_v0, %s3833_s22  ;;  %v4440_v0 = vld.sshfl [vmem:[#allocation1 + $0x28] sm:$0xff pattern:$0x75316420] }
 0x116   : > { %v1544_v43 = vpop.permute.xlu1 %1543  ;;  %v1542_v44 = vpop.permute.xlu0 %1541  ;;  %3215 = vst [vmem:[#allocation1 + $0x20] ss:$2 sm:$0xff] %v3889_v2 }
 0x117   : > { %v1548_v46 = vsel %vm1545_vm12, %v4328_v13, %v1542_v44  ;;  %v1549_v47 = vsel %vm1545_vm12, %v1542_v44, %v1544_v43  ;;  %v1660_v48 = vpop.permute.xlu2 %1659 }
 0x118   : > { %3653 = vmatpush.msk.msrb.mxu2 %vm238_vm1, %v1548_v46  ;;  %3655 = vmatpush.msk.msrb.mxu3 %vm238_vm1, %v1549_v47 }
 0x119   : > { %3654 = vmatmul.msk.f32.vlgmr.msrb.gmra.mxu2 %vm234_vm2, %v3648_v45  ;;  %3656 = vmatmul.msk.f32.vlgmr.msrb.gmra.mxu3 %vm234_vm2, %v3648_v45 }
 0x11c   : > { %2745 = vrot.lane.b32.xlu1 %v4319_v17, %s3834_s23  ;;  %2743 = vrot.lane.b32.xlu0 %v4321_v18, %s3834_s23  ;;  %v4427_v62 = vpop.f32.mrf.mxu2  ;;  %v4453_v17 = vld.sshfl [vmem:[#allocation1 + $0x18] sm:$0xff pattern:$0x75316420]  ;;  %v382_v19 = vpop.f32.mrf.mxu1 }
 0x11d   : > { %2741 = vrot.lane.b32.xlu2 %v4330_v23, %s3834_s23  ;;  %v324_v16 = vpop.f32.mrf.mxu3  ;;  %3213 = vst [vmem:[#allocation1 + $0x10] ss:$2 sm:$0xff] %v3893_v4  ;;  %v362_v25 = vpop.f32.mrf.mxu0 }
 0x11e   : > { %v1662_v54 = vpop.permute.xlu1 %1661  ;;  %v1538_v55 = vpop.permute.xlu0 %1537 }
 0x11f   : > { %v1670_v56 = vsel %vm1667_vm13, %v1662_v54, %v1664_v42  ;;  %v1546_v57 = vsel %vm1545_vm12, %v1536_v28, %v1538_v55  ;;  %v1547_v58 = vsel %vm1545_vm12, %v1538_v55, %v4328_v13  ;;  %v1788_v60 = vpop.permute.xlu2 %1787  ;;  %v1669_v61 = vsel %vm1667_vm13, %v1660_v48, %v1662_v54  ;;  %v4490_v28 = vld.sshfl [vmem:[#allocation1 + $0x28] sm:$0xff pattern:$0x75316420] }
 0x120   : > { %3649 = vmatpush.msk.msrb.mxu0 %vm238_vm1, %v1546_v57  ;;  %3651 = vmatpush.msk.msrb.mxu1 %vm238_vm1, %v1547_v58  ;;  %vm2277_vm12 = vcmask 375808  }
 0x121   : > { %3662 = vmatpush.msk.msra.mxu2 %vm238_vm1, %v1670_v56  ;;  %3650 = vmatmul.msk.f32.vlgmr.msrb.gmra.mxu0 %vm234_vm2, %v3648_v45 }
 0x122   : > { %3652 = vmatmul.msk.f32.vlgmr.msrb.gmra.mxu1 %vm234_vm2, %v3648_v45  ;;  %3663 = vmatmul.msk.f32.vlgmr.msra.gmra.mxu2 %vm234_vm2, %v3657_v59 }
 0x123   : > { %3660 = vmatpush.msk.msra.mxu1 %vm238_vm1, %v1669_v61 }
 0x124   : > { %2862 = vrot.lane.b32.xlu1 %v4354_v30, %s3835_s24  ;;  %2739 = vrot.lane.b32.xlu0 %v4324_v21, %s3834_s23  ;;  %v402_v18 = vpop.f32.mrf.mxu2  ;;  %v4477_v11 = vld.sshfl [vmem:[#allocation1 + $0x10] sm:$0xff pattern:$0x75316420]  ;;  %v4479_v12 = vld.sshfl [vmem:[#allocation1 + $0x18] sm:$0xff pattern:$0x75316420] }
 0x125   : > { %2737 = vrot.lane.b32.xlu2 %v4344_v24, %s3834_s23  ;;  %3334 = vst [vmem:[#allocation1 + $0x10] ss:$2 sm:$0xff] %v3893_v4  ;;  %v422_v26 = vpop.f32.mrf.mxu3  ;;  %v4496_v4 = vld.sshfl [vmem:[#allocation1 + $0x20] sm:$0xff pattern:$0x75316420] }
 0x126   : > { %v1666_v6 = vpop.permute.xlu0 %1665  ;;  %v1658_v7 = vpop.permute.xlu1 %1657  ;;  %3336 = vst [vmem:[#allocation1 + $0x20] ss:$2 sm:$0xff] %v3889_v2  ;;  %v363_v2 = vadd.f32 %v362_v25, %v4444_v5  ;;  %v423_v46 = vadd.f32 %v422_v26, %v324_v16  ;;  %v3684_v16 = vld [vmem:[%s4764_s1 + $0x78] sm:$0xff] }
 0x127   : > { %v1671_v9 = vsel %vm1667_vm13, %v1664_v42, %v1666_v6  ;;  %v1668_v10 = vsel %vm1667_vm13, %v1658_v7, %v1660_v48  ;;  %v4451_v15 = vpop.permute.xlu2 %1905  ;;  %v480_v41 = vpop.f32.mrf.mxu0 }
 0x128   : > { %3658 = vmatpush.msk.msra.mxu0 %vm238_vm1, %v1668_v10  ;;  %3664 = vmatpush.msk.msra.mxu3 %vm238_vm1, %v1671_v9  ;;  %v500_v30 = vpop.f32.mrf.mxu1 }
 0x129   : > { %3659 = vmatmul.msk.f32.vlgmr.msra.gmra.mxu0 %vm234_vm2, %v3657_v59  ;;  %3665 = vmatmul.msk.f32.vlgmr.msra.gmra.mxu3 %vm234_vm2, %v3657_v59 }
 0x12a   : > { %3661 = vmatmul.msk.f32.vlgmr.msra.gmra.mxu1 %vm234_vm2, %v3657_v59 }
 0x12c   : > { %2866 = vrot.lane.b32.xlu0 %v4364_v31, %s3835_s24  ;;  %2858 = vrot.lane.b32.xlu1 %v4368_v32, %s3835_s24  ;;  %v4494_v31 = vld.sshfl [vmem:[#allocation1 + $0x8] sm:$0xff pattern:$0x75316420] }
 0x12d   : > { %2864 = vrot.lane.b32.xlu2 %v4370_v33, %s3835_s24  ;;  %v520_v27 = vpop.f32.mrf.mxu2  ;;  %3332 = vst [vmem:[#allocation1] ss:$2 sm:$0xff] %v3891_v3  ;;  %v383_v3 = vadd.f32 %v382_v19, %v4436_v63 }
 0x12e   : > { %v1784_v21 = vpop.permute.xlu0 %1783  ;;  %v1786_v22 = vpop.permute.xlu1 %1785 }
 0x12f   : > { %v1792_v13 = vsel %vm1789_vm14, %v1784_v21, %v1786_v22  ;;  %v1793_v23 = vsel %vm1789_vm14, %v1786_v22, %v1788_v60  ;;  %v4475_v24 = vpop.permute.xlu2 %1901  ;;  %v540_v42 = vpop.f32.mrf.mxu3  ;;  %v544_v47 = vadd.f32 %v500_v30, %v383_v3 }
 0x130   : > { %3671 = vmatpush.msk.msrb.mxu2 %vm238_vm1, %v1792_v13  ;;  %3673 = vmatpush.msk.msrb.mxu3 %vm238_vm1, %v1793_v23  ;;  %v622_v45 = vpop.f32.mrf.mxu1  ;;  %v602_v55 = vpop.f32.mrf.mxu0  ;;  %v546_v58 = vadd.f32 %v540_v42, %v423_v46 }
 0x131   : > { %3672 = vmatmul.msk.f32.vlgmr.msrb.gmra.mxu2 %vm234_vm2, %v3666_v14  ;;  %3674 = vmatmul.msk.f32.vlgmr.msrb.gmra.mxu3 %vm234_vm2, %v3666_v14  ;;  %v666_v59 = vadd.f32 %v622_v45, %v544_v47 }
 0x134   : > { %2983 = vrot.lane.b32.xlu0 %v4396_v49, %s3836_s25  ;;  %2985 = vrot.lane.b32.xlu1 %v4405_v51, %s3836_s25  ;;  %v3675_v51 = vld [vmem:[%s4764_s1 + $0x70] sm:$0xff] }
 0x135   : > { %2860 = vrot.lane.b32.xlu2 %v4352_v29, %s3835_s24  ;;  %v403_v29 = vadd.f32 %v402_v18, %v4427_v62  ;;  %v642_v43 = vpop.f32.mrf.mxu2 }
 0x136   : > { %v1782_v32 = vpop.permute.xlu1 %1781  ;;  %v1780_v33 = vpop.permute.xlu0 %1779 }
 0x137   : > { %v1791_v34 = vsel %vm1789_vm14, %v1782_v32, %v1784_v21  ;;  %v1790_v38 = vsel %vm1789_vm14, %v1780_v33, %v1782_v32  ;;  %v4501_v39 = vpop.permute.xlu2 %2029  ;;  %v545_v44 = vadd.f32 %v520_v27, %v403_v29  ;;  %v662_v57 = vpop.f32.mrf.mxu3 }
 0x138   : > { %3667 = vmatpush.msk.msrb.mxu0 %vm238_vm1, %v1790_v38  ;;  %3669 = vmatpush.msk.msrb.mxu1 %vm238_vm1, %v1791_v34  ;;  %v668_v5 = vadd.f32 %v662_v57, %v546_v58 }
 0x139   : > { %3668 = vmatmul.msk.f32.vlgmr.msrb.gmra.mxu0 %vm234_vm2, %v3666_v14  ;;  %3670 = vmatmul.msk.f32.vlgmr.msrb.gmra.mxu1 %vm234_vm2, %v3666_v14  ;;  %v667_v56 = vadd.f32 %v642_v43, %v545_v44 }
 0x13c   : > { %2981 = vrot.lane.b32.xlu1 %v4398_v50, %s3836_s25  ;;  %2979 = vrot.lane.b32.xlu0 %v4407_v52, %s3836_s25 }
 0x13d   : > { %2987 = vrot.lane.b32.xlu2 %v4412_v53, %s3836_s25  ;;  %v543_v53 = vadd.f32 %v480_v41, %v363_v2  ;;  %v764_v60 = vpop.f32.mrf.mxu2  ;;  %v3340_v2 = vld.sshfl [vmem:[#allocation1 + $0x20] sm:$0xff pattern:$0x75316420] }
 0x13e   : > { %v1910_v48 = vpop.permute.xlu1 %1909  ;;  %v1908_v49 = vpop.permute.xlu0 %1907  ;;  %v789_v62 = vadd.f32 %v764_v60, %v667_v56 }
 0x13f   : > { %v1914_v50 = vsel %vm1911_vm15, %v4451_v15, %v1908_v49  ;;  %v1915_v52 = vsel %vm1911_vm15, %v1908_v49, %v1910_v48  ;;  %v2026_v54 = vpop.permute.xlu2 %2025  ;;  %v665_v61 = vadd.f32 %v602_v55, %v543_v53  ;;  %v744_v63 = vpop.f32.mrf.mxu1  ;;  %v3337_v55 = vld.sshfl [vmem:[#allocation1 + $0x8] sm:$0xff pattern:$0x75316420] }
 0x140   : > { %3680 = vmatpush.msk.msra.mxu2 %vm238_vm1, %v1914_v50  ;;  %3682 = vmatpush.msk.msra.mxu3 %vm238_vm1, %v1915_v52  ;;  %v788_v6 = vadd.f32 %v744_v63, %v666_v59  ;;  %v724_v19 = vpop.f32.mrf.mxu0  ;;  %v784_v22 = vpop.f32.mrf.mxu3  ;;  %v3341_v53 = vld.sshfl [vmem:[#allocation1 + $0x28] sm:$0xff pattern:$0x75316420] }
 0x141   : > { %3681 = vmatmul.msk.f32.vlgmr.msra.gmra.mxu2 %vm234_vm2, %v3675_v51  ;;  %3683 = vmatmul.msk.f32.vlgmr.msra.gmra.mxu3 %vm234_vm2, %v3675_v51  ;;  %v787_v21 = vadd.f32 %v724_v19, %v665_v61  ;;  %v790_v14 = vadd.f32 %v784_v22, %v668_v5  ;;  %v3702_v61 = vld [vmem:[%s4764_s1 + $0x88] sm:$0xff] }
 0x144   : > { %3108 = vrot.lane.b32.xlu1 %v4440_v0, %s3837_s26  ;;  %3106 = vrot.lane.b32.xlu0 %v4442_v1, %s3837_s26 }
 0x145   : > { %3104 = vrot.lane.b32.xlu2 %v4453_v17, %s3837_s26 }
 0x146   : > { %v2028_v7 = vpop.permute.xlu1 %2027  ;;  %v1904_v9 = vpop.permute.xlu0 %1903 }
 0x147   : > { %v2036_v10 = vsel %vm2033_vm10, %v2028_v7, %v4501_v39  ;;  %v1912_v0 = vsel %vm1911_vm15, %v4475_v24, %v1904_v9  ;;  %v1913_v1 = vsel %vm1911_vm15, %v1904_v9, %v4451_v15  ;;  %v2154_v18 = vpop.permute.xlu2 %2153  ;;  %v2035_v17 = vsel %vm2033_vm10, %v2026_v54, %v2028_v7 }
 0x148   : > { %3676 = vmatpush.msk.msra.mxu0 %vm238_vm1, %v1912_v0  ;;  %3678 = vmatpush.msk.msra.mxu1 %vm238_vm1, %v1913_v1 }
 0x149   : > { %3689 = vmatpush.msk.msrb.mxu2 %vm238_vm1, %v2036_v10  ;;  %3677 = vmatmul.msk.f32.vlgmr.msra.gmra.mxu0 %vm234_vm2, %v3675_v51 }
 0x14a   : > { %3679 = vmatmul.msk.f32.vlgmr.msra.gmra.mxu1 %vm234_vm2, %v3675_v51  ;;  %3690 = vmatmul.msk.f32.vlgmr.msrb.gmra.mxu2 %vm234_vm2, %v3684_v16 }
 0x14b   : > { %3687 = vmatpush.msk.msrb.mxu1 %vm238_vm1, %v2035_v17  ;;  %v3711_v17 = vld [vmem:[%s4764_s1 + $0x90] sm:$0xff] }
 0x14c   : > { %3225 = vrot.lane.b32.xlu1 %v4479_v12, %s3838_s27  ;;  %3102 = vrot.lane.b32.xlu0 %v4447_v8, %s3837_s26  ;;  %v886_v15 = vpop.f32.mrf.mxu2  ;;  %v906_v32 = vpop.f32.mrf.mxu3 }
 0x14d   : > { %3100 = vrot.lane.b32.xlu2 %v4467_v20, %s3837_s26  ;;  %v911_v13 = vadd.f32 %v886_v15, %v789_v62  ;;  %v912_v33 = vadd.f32 %v906_v32, %v790_v14 }
 0x14e   : > { %v2032_v23 = vpop.permute.xlu0 %2031  ;;  %v2024_v24 = vpop.permute.xlu1 %2023 }
 0x14f   : > { %v2037_v25 = vsel %vm2033_vm10, %v4501_v39, %v2032_v23  ;;  %v2034_v26 = vsel %vm2033_vm10, %v2024_v24, %v2026_v54  ;;  %v4559_v27 = vpop.permute.xlu2 %2271  ;;  %v846_v12 = vpop.f32.mrf.mxu0  ;;  %v3693_v39 = vld [vmem:[%s4764_s1 + $0x80] sm:$0xff]  ;;  %v3338_v54 = vld.sshfl [vmem:[#allocation1 + $0x10] sm:$0xff pattern:$0x75316420] }
 0x150   : > { %v866_v30 = vpop.f32.mrf.mxu1  ;;  %3685 = vmatpush.msk.msrb.mxu0 %vm238_vm1, %v2034_v26  ;;  %3691 = vmatpush.msk.msrb.mxu3 %vm238_vm1, %v2037_v25  ;;  %v909_v20 = vadd.f32 %v846_v12, %v787_v21 }
 0x151   : > { %v910_v8 = vadd.f32 %v866_v30, %v788_v6  ;;  %3686 = vmatmul.msk.f32.vlgmr.msrb.gmra.mxu0 %vm234_vm2, %v3684_v16  ;;  %3692 = vmatmul.msk.f32.vlgmr.msrb.gmra.mxu3 %vm234_vm2, %v3684_v16 }
 0x152   : > { %3688 = vmatmul.msk.f32.vlgmr.msrb.gmra.mxu1 %vm234_vm2, %v3684_v16 }
 0x154   : > { %3229 = vrot.lane.b32.xlu0 %v4490_v28, %s3838_s27  ;;  %3221 = vrot.lane.b32.xlu1 %v4494_v31, %s3838_s27 }
 0x155   : > { %3227 = vrot.lane.b32.xlu2 %v4496_v4, %s3838_s27  ;;  %v1008_v3 = vpop.f32.mrf.mxu2  ;;  %v3339_v4 = vld.sshfl [vmem:[#allocation1 + $0x18] sm:$0xff pattern:$0x75316420] }
 0x156   : > { %v2150_v34 = vpop.permute.xlu0 %2149  ;;  %v2152_v38 = vpop.permute.xlu1 %2151  ;;  %v1033_v28 = vadd.f32 %v1008_v3, %v911_v13 }
 0x157   : > { %v2158_v41 = vsel %vm2155_vm11, %v2150_v34, %v2152_v38  ;;  %v2159_v29 = vsel %vm2155_vm11, %v2152_v38, %v2154_v18  ;;  %v2268_v42 = vpop.permute.xlu2 %2267  ;;  %v968_v43 = vpop.f32.mrf.mxu0 }
 0x158   : > { %3698 = vmatpush.msk.msra.mxu2 %vm238_vm1, %v2158_v41  ;;  %3700 = vmatpush.msk.msra.mxu3 %vm238_vm1, %v2159_v29  ;;  %v988_v31 = vpop.f32.mrf.mxu1  ;;  %v1031_v45 = vadd.f32 %v968_v43, %v909_v20 }
 0x159   : > { %3699 = vmatmul.msk.f32.vlgmr.msra.gmra.mxu2 %vm234_vm2, %v3693_v39  ;;  %3701 = vmatmul.msk.f32.vlgmr.msra.gmra.mxu3 %vm234_vm2, %v3693_v39  ;;  %v1032_v44 = vadd.f32 %v988_v31, %v910_v8 }
 0x15c   : > { %3346 = vrot.lane.b32.xlu0 %v3339_v4, %s3839_s28  ;;  %3348 = vrot.lane.b32.xlu1 %v3340_v2, %s3839_s28  ;;  %v1028_v46 = vpop.f32.mrf.mxu3 }
 0x15d   : > { %3223 = vrot.lane.b32.xlu2 %v4477_v11, %s3838_s27  ;;  %v1034_v47 = vadd.f32 %v1028_v46, %v912_v33  ;;  %s3794_s27 = sshll.u32 %s4769_s16, 5 }
 0x15e   : > { %v2148_v48 = vpop.permute.xlu1 %2147  ;;  %v2146_v49 = vpop.permute.xlu0 %2145  ;;  %s197_s9 = scalar_lea.vmem %s4767_s4, %s3794_s27 }
 0x15f   : > { %v2157_v51 = vsel %vm2155_vm11, %v2148_v48, %v2150_v34  ;;  %v2156_v50 = vsel %vm2155_vm11, %v2146_v49, %v2148_v48  ;;  %v2502_v52 = vpop.permute.xlu2 %2501  ;;  %v3729_v34 = vld [vmem:[%s4764_s1 + $0xa0] sm:$0xff] }
 0x160   : > { %3694 = vmatpush.msk.msra.mxu0 %vm238_vm1, %v2156_v50  ;;  %3696 = vmatpush.msk.msra.mxu1 %vm238_vm1, %v2157_v51 }
 0x161   : > { %3695 = vmatmul.msk.f32.vlgmr.msra.gmra.mxu0 %vm234_vm2, %v3693_v39  ;;  %3697 = vmatmul.msk.f32.vlgmr.msra.gmra.mxu1 %vm234_vm2, %v3693_v39 }
 0x164   : > { %3344 = vrot.lane.b32.xlu1 %v3338_v54, %s3839_s28  ;;  %3342 = vrot.lane.b32.xlu0 %v3337_v55, %s3839_s28  ;;  %v1130_v11 = vpop.f32.mrf.mxu2  ;;  %v1150_v56 = vpop.f32.mrf.mxu3  ;;  %v3738_v54 = vld [vmem:[%s4764_s1 + $0xa8] sm:$0xff] }
 0x165   : > { %3350 = vrot.lane.b32.xlu2 %v3341_v53, %s3839_s28  ;;  %v1155_v57 = vadd.f32 %v1130_v11, %v1033_v28  ;;  %v1156_v58 = vadd.f32 %v1150_v56, %v1034_v47 }
 0x166   : > { %v2276_v59 = vpop.permute.xlu1 %2275  ;;  %v2274_v60 = vpop.permute.xlu0 %2273 }
 0x167   : > { %v2280_v62 = vsel %vm2277_vm12, %v4559_v27, %v2274_v60  ;;  %v2281_v63 = vsel %vm2277_vm12, %v2274_v60, %v2276_v59  ;;  %v2498_v5 = vpop.permute.xlu2 %2497  ;;  %v1110_v6 = vpop.f32.mrf.mxu1 }
 0x168   : > { %3707 = vmatpush.msk.msrb.mxu2 %vm238_vm1, %v2280_v62  ;;  %3709 = vmatpush.msk.msrb.mxu3 %vm238_vm1, %v2281_v63  ;;  %v1154_v7 = vadd.f32 %v1110_v6, %v1032_v44  ;;  %v1090_v9 = vpop.f32.mrf.mxu0  ;;  %v3747_v6 = vld [vmem:[%s4764_s1 + $0xb0] sm:$0xff] }
 0x169   : > { %3708 = vmatmul.msk.f32.vlgmr.msrb.gmra.mxu2 %vm234_vm2, %v3702_v61  ;;  %3710 = vmatmul.msk.f32.vlgmr.msrb.gmra.mxu3 %vm234_vm2, %v3702_v61  ;;  %v1153_v10 = vadd.f32 %v1090_v9, %v1031_v45 }
 0x16a   : > { %3716 = vmatpush.msk.msra.mxu2 %vm238_vm1, %v4223_v36  ;;  %3718 = vmatpush.msk.msra.mxu3 %vm238_vm1, %v4237_v40 }
 0x16e   : > { %v2500_v0 = vpop.permute.xlu1 %2499  ;;  %v2270_v1 = vpop.permute.xlu0 %2269 }
 0x16f   : > { %v2507_v16 = vsel %vm229_vm0, %v2500_v0, %v2502_v52  ;;  %v2278_v18 = vsel %vm2277_vm12, %v2268_v42, %v2270_v1  ;;  %v2279_v19 = vsel %vm2277_vm12, %v2270_v1, %v4559_v27  ;;  %v2625_v21 = vpop.permute.xlu2 %2624  ;;  %v2506_v36 = vsel %vm229_vm0, %v2498_v5, %v2500_v0 }
 0x170   : > { %3703 = vmatpush.msk.msrb.mxu0 %vm238_vm1, %v2278_v18  ;;  %3705 = vmatpush.msk.msrb.mxu1 %vm238_vm1, %v2279_v19 }
 0x171   : > { %3725 = vmatpush.msk.msrb.mxu2 %vm238_vm1, %v2507_v16  ;;  %3704 = vmatmul.msk.f32.vlgmr.msrb.gmra.mxu0 %vm234_vm2, %v3702_v61 }
 0x172   : > { %3706 = vmatmul.msk.f32.vlgmr.msrb.gmra.mxu1 %vm234_vm2, %v3702_v61  ;;  %3717 = vmatmul.msk.f32.vlgmr.msra.gmra.mxu2 %vm234_vm2, %v3711_v17 }
 0x173   : > { %3714 = vmatpush.msk.msra.mxu1 %vm238_vm1, %v4219_v35  ;;  %3719 = vmatmul.msk.f32.vlgmr.msra.gmra.mxu3 %vm234_vm2, %v3711_v17  ;;  %v3720_v35 = vld [vmem:[%s4764_s1 + $0x98] sm:$0xff] }
 0x174   : > { %3712 = vmatpush.msk.msra.mxu0 %vm238_vm1, %v4235_v37  ;;  %v1252_v40 = vpop.f32.mrf.mxu2  ;;  %v1272_v22 = vpop.f32.mrf.mxu3 }
 0x175   : > { %3723 = vmatpush.msk.msrb.mxu1 %vm238_vm1, %v2506_v36  ;;  %v1277_v14 = vadd.f32 %v1252_v40, %v1155_v57  ;;  %v1278_v15 = vadd.f32 %v1272_v22, %v1156_v58 }
 0x176   : > { %v2504_v13 = vpop.permute.xlu0 %2503  ;;  %v2496_v23 = vpop.permute.xlu1 %2495 }
 0x177   : > { %v2508_v24 = vsel %vm229_vm0, %v2502_v52, %v2504_v13  ;;  %v2505_v25 = vsel %vm229_vm0, %v2496_v23, %v2498_v5  ;;  %v4633_v26 = vpop.permute.xlu2 %2741  ;;  %v1212_v30 = vpop.f32.mrf.mxu0 }
 0x178   : > { %v1232_v27 = vpop.f32.mrf.mxu1  ;;  %3721 = vmatpush.msk.msrb.mxu0 %vm238_vm1, %v2505_v25  ;;  %3727 = vmatpush.msk.msrb.mxu3 %vm238_vm1, %v2508_v24  ;;  %v1275_v8 = vadd.f32 %v1212_v30, %v1153_v10 }
 0x179   : > { %v1276_v37 = vadd.f32 %v1232_v27, %v1154_v7  ;;  %3713 = vmatmul.msk.f32.vlgmr.msra.gmra.mxu0 %vm234_vm2, %v3711_v17 }
 0x17a   : > { %3715 = vmatmul.msk.f32.vlgmr.msra.gmra.mxu1 %vm234_vm2, %v3711_v17  ;;  %3726 = vmatmul.msk.f32.vlgmr.msrb.gmra.mxu2 %vm234_vm2, %v3720_v35 }
 0x17b   : > { %3728 = vmatmul.msk.f32.vlgmr.msrb.gmra.mxu3 %vm234_vm2, %v3720_v35 }
 0x17d   : > { %v1374_v39 = vpop.f32.mrf.mxu2 }
 0x17e   : > { %v2621_v12 = vpop.permute.xlu0 %2620  ;;  %v2623_v32 = vpop.permute.xlu1 %2622  ;;  %v1399_v41 = vadd.f32 %v1374_v39, %v1277_v14 }
 0x17f   : > { %v2628_v20 = vsel %vm447_vm3, %v2621_v12, %v2623_v32  ;;  %v2629_v33 = vsel %vm447_vm3, %v2623_v32, %v2625_v21  ;;  %v2738_v38 = vpop.permute.xlu2 %2737  ;;  %v1334_v42 = vpop.f32.mrf.mxu0 }
 0x180   : > { %3734 = vmatpush.msk.msra.mxu2 %vm238_vm1, %v2628_v20  ;;  %3736 = vmatpush.msk.msra.mxu3 %vm238_vm1, %v2629_v33  ;;  %v1354_v29 = vpop.f32.mrf.mxu1  ;;  %v1397_v28 = vadd.f32 %v1334_v42, %v1275_v8 }
 0x181   : > { %3722 = vmatmul.msk.f32.vlgmr.msrb.gmra.mxu0 %vm234_vm2, %v3720_v35  ;;  %v1398_v3 = vadd.f32 %v1354_v29, %v1276_v37 }
 0x182   : > { %3724 = vmatmul.msk.f32.vlgmr.msrb.gmra.mxu1 %vm234_vm2, %v3720_v35  ;;  %3735 = vmatmul.msk.f32.vlgmr.msra.gmra.mxu2 %vm234_vm2, %v3729_v34  ;;  %v3756_v35 = vld [vmem:[%s4764_s1 + $0xb8] sm:$0xff] }
 0x183   : > { %3737 = vmatmul.msk.f32.vlgmr.msra.gmra.mxu3 %vm234_vm2, %v3729_v34 }
 0x184   : > { %v1394_v31 = vpop.f32.mrf.mxu3 }
 0x185   : > { %v1400_v43 = vadd.f32 %v1394_v31, %v1278_v15 }
 0x186   : > { %v2619_v4 = vpop.permute.xlu1 %2618  ;;  %v2617_v2 = vpop.permute.xlu0 %2616 }
 0x187   : > { %v2627_v44 = vsel %vm447_vm3, %v2619_v4, %v2621_v12  ;;  %v2626_v45 = vsel %vm447_vm3, %v2617_v2, %v2619_v4  ;;  %v2865_v46 = vpop.permute.xlu2 %2864 }
 0x188   : > { %3730 = vmatpush.msk.msra.mxu0 %vm238_vm1, %v2626_v45  ;;  %3732 = vmatpush.msk.msra.mxu1 %vm238_vm1, %v2627_v44 }
 0x189   : > { %3731 = vmatmul.msk.f32.vlgmr.msra.gmra.mxu0 %vm234_vm2, %v3729_v34 }
 0x18a   : > { %3733 = vmatmul.msk.f32.vlgmr.msra.gmra.mxu1 %vm234_vm2, %v3729_v34 }
 0x18c   : > { %v1496_v47 = vpop.f32.mrf.mxu2  ;;  %v1516_v48 = vpop.f32.mrf.mxu3 }
 0x18d   : > { %v1521_v49 = vadd.f32 %v1496_v47, %v1399_v41  ;;  %v1522_v51 = vadd.f32 %v1516_v48, %v1400_v43 }
 0x18e   : > { %v2746_v50 = vpop.permute.xlu1 %2745  ;;  %v2744_v52 = vpop.permute.xlu0 %2743 }
 0x18f   : > { %v2749_v55 = vsel %vm569_vm4, %v4633_v26, %v2744_v52  ;;  %v2750_v53 = vsel %vm569_vm4, %v2744_v52, %v2746_v50  ;;  %v1476_v11 = vpop.f32.mrf.mxu1  ;;  %v2861_v56 = vpop.permute.xlu2 %2860 }
 0x190   : > { %3743 = vmatpush.msk.msrb.mxu2 %vm238_vm1, %v2749_v55  ;;  %3745 = vmatpush.msk.msrb.mxu3 %vm238_vm1, %v2750_v53  ;;  %v1520_v57 = vadd.f32 %v1476_v11, %v1398_v3  ;;  %v1456_v58 = vpop.f32.mrf.mxu0 }
 0x191   : > { %3744 = vmatmul.msk.f32.vlgmr.msrb.gmra.mxu2 %vm234_vm2, %v3738_v54  ;;  %3746 = vmatmul.msk.f32.vlgmr.msrb.gmra.mxu3 %vm234_vm2, %v3738_v54  ;;  %v1519_v59 = vadd.f32 %v1456_v58, %v1397_v28  ;;  %v3461_v58 = vld [vmem:[%s4766_s3] sm:$0xff] }
 0x196   : > { %v2863_v60 = vpop.permute.xlu1 %2862  ;;  %v2740_v61 = vpop.permute.xlu0 %2739 }
 0x197   : > { %v2870_v62 = vsel %vm691_vm5, %v2863_v60, %v2865_v46  ;;  %v2747_v63 = vsel %vm569_vm4, %v2738_v38, %v2740_v61  ;;  %v2748_v5 = vsel %vm569_vm4, %v2740_v61, %v4633_v26  ;;  %v2988_v7 = vpop.permute.xlu2 %2987  ;;  %v2869_v9 = vsel %vm691_vm5, %v2861_v56, %v2863_v60 }
 0x198   : > { %3739 = vmatpush.msk.msrb.mxu0 %vm238_vm1, %v2747_v63  ;;  %3741 = vmatpush.msk.msrb.mxu1 %vm238_vm1, %v2748_v5 }
 0x199   : > { %3752 = vmatpush.msk.msra.mxu2 %vm238_vm1, %v2870_v62  ;;  %3740 = vmatmul.msk.f32.vlgmr.msrb.gmra.mxu0 %vm234_vm2, %v3738_v54 }
 0x19a   : > { %3742 = vmatmul.msk.f32.vlgmr.msrb.gmra.mxu1 %vm234_vm2, %v3738_v54  ;;  %3753 = vmatmul.msk.f32.vlgmr.msra.gmra.mxu2 %vm234_vm2, %v3747_v6 }
 0x19b   : > { %3750 = vmatpush.msk.msra.mxu1 %vm238_vm1, %v2869_v9 }
 0x19c   : > { %v1618_v10 = vpop.f32.mrf.mxu2  ;;  %v1638_v0 = vpop.f32.mrf.mxu3 }
 0x19d   : > { %v1643_v1 = vadd.f32 %v1618_v10, %v1521_v49  ;;  %v1644_v16 = vadd.f32 %v1638_v0, %v1522_v51 }
 0x19e   : > { %v2867_v18 = vpop.permute.xlu0 %2866  ;;  %v2859_v19 = vpop.permute.xlu1 %2858 }
 0x19f   : > { %v1598_v17 = vpop.f32.mrf.mxu1  ;;  %v2871_v21 = vsel %vm691_vm5, %v2865_v46, %v2867_v18  ;;  %v2868_v36 = vsel %vm691_vm5, %v2859_v19, %v2861_v56  ;;  %v1578_v40 = vpop.f32.mrf.mxu0  ;;  %v3765_v46 = vld [vmem:[%s4764_s1 + $0xc0] sm:$0xff]  ;;  %v3774_v56 = vld [vmem:[%s4764_s1 + $0xc8] sm:$0xff] }
 0x1a0   : > { %v1642_v22 = vadd.f32 %v1598_v17, %v1520_v57  ;;  %v1641_v14 = vadd.f32 %v1578_v40, %v1519_v59  ;;  %3748 = vmatpush.msk.msra.mxu0 %vm238_vm1, %v2868_v36  ;;  %3754 = vmatpush.msk.msra.mxu3 %vm238_vm1, %v2871_v21  ;;  %v3105_v15 = vpop.permute.xlu2 %3104  ;;  %v3849_v57 = vmov 0  }
 0x1a1   : > { %3749 = vmatmul.msk.f32.vlgmr.msra.gmra.mxu0 %vm234_vm2, %v3747_v6  ;;  %3755 = vmatmul.msk.f32.vlgmr.msra.gmra.mxu3 %vm234_vm2, %v3747_v6 }
 0x1a2   : > { %3751 = vmatmul.msk.f32.vlgmr.msra.gmra.mxu1 %vm234_vm2, %v3747_v6  ;;  %3823 = vset.pattern.permute.xlu0 %v3849_v57 }
 0x1a3   : > { %3464 = vperm.xlu0 %3823, %v3461_v58   ;;  %3822 = vset.pattern.permute.xlu2 %v3849_v57 }
 0x1a5   : > { %v1740_v13 = vpop.f32.mrf.mxu2 }
 0x1a6   : > { %v1765_v23 = vadd.f32 %v1740_v13, %v1643_v1  ;;  %v2984_v24 = vpop.permute.xlu0 %2983  ;;  %v2986_v25 = vpop.permute.xlu1 %2985 }
 0x1a7   : > { %v1720_v26 = vpop.f32.mrf.mxu1  ;;  %v2991_v27 = vsel %vm813_vm6, %v2984_v24, %v2986_v25  ;;  %v2992_v37 = vsel %vm813_vm6, %v2986_v25, %v2988_v7  ;;  %v1700_v30 = vpop.f32.mrf.mxu0 }
 0x1a8   : > { %v1764_v8 = vadd.f32 %v1720_v26, %v1642_v22  ;;  %v1763_v12 = vadd.f32 %v1700_v30, %v1641_v14  ;;  %3761 = vmatpush.msk.msrb.mxu2 %vm238_vm1, %v2991_v27  ;;  %3763 = vmatpush.msk.msrb.mxu3 %vm238_vm1, %v2992_v37  ;;  %v3101_v32 = vpop.permute.xlu2 %3100  ;;  %v3451_v30 = vld [vmem:[%s4765_s2] sm:$0xff] }
 0x1a9   : > { %3762 = vmatmul.msk.f32.vlgmr.msrb.gmra.mxu2 %vm234_vm2, %v3756_v35  ;;  %3764 = vmatmul.msk.f32.vlgmr.msrb.gmra.mxu3 %vm234_vm2, %v3756_v35 }
 0x1aa   : > { %3454 = vperm.xlu2 %3822, %v3451_v30  }
 0x1ac   : > { %v1760_v20 = vpop.f32.mrf.mxu3 }
 0x1ad   : > { %v1766_v33 = vadd.f32 %v1760_v20, %v1644_v16 }
 0x1ae   : > { %v2982_v34 = vpop.permute.xlu1 %2981  ;;  %v2980_v38 = vpop.permute.xlu0 %2979 }
 0x1af   : > { %v2990_v39 = vsel %vm813_vm6, %v2982_v34, %v2984_v24  ;;  %v2989_v41 = vsel %vm813_vm6, %v2980_v38, %v2982_v34 }
 0x1b0   : > { %3757 = vmatpush.msk.msrb.mxu0 %vm238_vm1, %v2989_v41  ;;  %3759 = vmatpush.msk.msrb.mxu1 %vm238_vm1, %v2990_v39  ;;  %v3228_v29 = vpop.permute.xlu2 %3227 }
 0x1b1   : > { %3758 = vmatmul.msk.f32.vlgmr.msrb.gmra.mxu0 %vm234_vm2, %v3756_v35  ;;  %3760 = vmatmul.msk.f32.vlgmr.msrb.gmra.mxu1 %vm234_vm2, %v3756_v35 }
 0x1b4   : > { %v1862_v42 = vpop.f32.mrf.mxu2  ;;  %v1882_v3 = vpop.f32.mrf.mxu3 }
 0x1b5   : > { %v1887_v28 = vadd.f32 %v1862_v42, %v1765_v23  ;;  %v1888_v31 = vadd.f32 %v1882_v3, %v1766_v33 }
 0x1b6   : > { %v1842_v43 = vpop.f32.mrf.mxu1  ;;  %v3109_v4 = vpop.permute.xlu1 %3108 }
 0x1b7   : > { %v1886_v2 = vadd.f32 %v1842_v43, %v1764_v8  ;;  %v3107_v44 = vpop.permute.xlu0 %3106  ;;  %v1822_v45 = vpop.f32.mrf.mxu0 }
 0x1b8   : > { %v3112_v47 = vsel %vm935_vm7, %v3105_v15, %v3107_v44  ;;  %v3113_v48 = vsel %vm935_vm7, %v3107_v44, %v3109_v4  ;;  %v1885_v49 = vadd.f32 %v1822_v45, %v1763_v12  ;;  %v3224_v51 = vpop.permute.xlu2 %3223 }
 0x1b9   : > { %3770 = vmatpush.msk.msra.mxu2 %vm238_vm1, %v3112_v47  ;;  %3772 = vmatpush.msk.msra.mxu3 %vm238_vm1, %v3113_v48 }
 0x1ba   : > { %3771 = vmatmul.msk.f32.vlgmr.msra.gmra.mxu2 %vm234_vm2, %v3765_v46  ;;  %3773 = vmatmul.msk.f32.vlgmr.msra.gmra.mxu3 %vm234_vm2, %v3765_v46 }
 0x1be   : > { %v3226_v50 = vpop.permute.xlu1 %3225 }
 0x1bf   : > { %v3233_v52 = vsel %vm1057_vm8, %v3226_v50, %v3228_v29  ;;  %v3103_v54 = vpop.permute.xlu0 %3102  ;;  %v3232_v11 = vsel %vm1057_vm8, %v3224_v51, %v3226_v50 }
 0x1c0   : > { %v3110_v55 = vsel %vm935_vm7, %v3101_v32, %v3103_v54  ;;  %v3111_v53 = vsel %vm935_vm7, %v3103_v54, %v3105_v15  ;;  %3779 = vmatpush.msk.msrb.mxu2 %vm238_vm1, %v3233_v52  ;;  %v3351_v16 = vpop.permute.xlu2 %3350  ;;  %v3783_v15 = vld [vmem:[%s4764_s1 + $0xd0] sm:$0xff] }
 0x1c1   : > { %3766 = vmatpush.msk.msra.mxu0 %vm238_vm1, %v3110_v55  ;;  %3768 = vmatpush.msk.msra.mxu1 %vm238_vm1, %v3111_v53 }
 0x1c2   : > { %3767 = vmatmul.msk.f32.vlgmr.msra.gmra.mxu0 %vm234_vm2, %v3765_v46  ;;  %3769 = vmatmul.msk.f32.vlgmr.msra.gmra.mxu1 %vm234_vm2, %v3765_v46 }
 0x1c3   : > { %3777 = vmatpush.msk.msrb.mxu1 %vm238_vm1, %v3232_v11  ;;  %3780 = vmatmul.msk.f32.vlgmr.msrb.gmra.mxu2 %vm234_vm2, %v3774_v56 }
 0x1c4   : > { %v1984_v59 = vpop.f32.mrf.mxu2  ;;  %v2004_v60 = vpop.f32.mrf.mxu3 }
 0x1c5   : > { %v2009_v61 = vadd.f32 %v1984_v59, %v1887_v28  ;;  %v2010_v62 = vadd.f32 %v2004_v60, %v1888_v31 }
 0x1c6   : > { %v3222_v63 = vpop.permute.xlu1 %3221  ;;  %v1944_v5 = vpop.f32.mrf.mxu0 }
 0x1c7   : > { %v1964_v6 = vpop.f32.mrf.mxu1  ;;  %v3230_v7 = vpop.permute.xlu0 %3229  ;;  %v3231_v9 = vsel %vm1057_vm8, %v3222_v63, %v3224_v51  ;;  %v2007_v10 = vadd.f32 %v1944_v5, %v1885_v49 }
 0x1c8   : > { %v2008_v0 = vadd.f32 %v1964_v6, %v1886_v2  ;;  %v3234_v1 = vsel %vm1057_vm8, %v3228_v29, %v3230_v7  ;;  %3775 = vmatpush.msk.msrb.mxu0 %vm238_vm1, %v3231_v9 }
 0x1c9   : > { %3781 = vmatpush.msk.msrb.mxu3 %vm238_vm1, %v3234_v1 }
 0x1ca   : > { %3776 = vmatmul.msk.f32.vlgmr.msrb.gmra.mxu0 %vm234_vm2, %v3774_v56  ;;  %3778 = vmatmul.msk.f32.vlgmr.msrb.gmra.mxu1 %vm234_vm2, %v3774_v56 }
 0x1cb   : > { %3782 = vmatmul.msk.f32.vlgmr.msrb.gmra.mxu3 %vm234_vm2, %v3774_v56 }
 0x1cd   : > { %v2106_v18 = vpop.f32.mrf.mxu2 }
 0x1ce   : > { %v2131_v19 = vadd.f32 %v2106_v18, %v2009_v61  ;;  %v3349_v17 = vpop.permute.xlu1 %3348  ;;  %v2066_v21 = vpop.f32.mrf.mxu0 }
 0x1cf   : > { %v2086_v36 = vpop.f32.mrf.mxu1  ;;  %v3347_v40 = vpop.permute.xlu0 %3346  ;;  %v3355_v22 = vsel %vm1179_vm9, %v3349_v17, %v3351_v16  ;;  %v2129_v14 = vadd.f32 %v2066_v21, %v2007_v10 }
 0x1d0   : > { %v2130_v13 = vadd.f32 %v2086_v36, %v2008_v0  ;;  %v3354_v23 = vsel %vm1179_vm9, %v3347_v40, %v3349_v17  ;;  %3790 = vmatpush.msk.msra.mxu3 %vm238_vm1, %v3355_v22 }
 0x1d1   : > { %3788 = vmatpush.msk.msra.mxu2 %vm238_vm1, %v3354_v23 }
 0x1d2   : > { %3789 = vmatmul.msk.f32.vlgmr.msra.gmra.mxu2 %vm234_vm2, %v3783_v15 }
 0x1d3   : > { %3791 = vmatmul.msk.f32.vlgmr.msra.gmra.mxu3 %vm234_vm2, %v3783_v15 }
 0x1d4   : > { %v2126_v24 = vpop.f32.mrf.mxu3 }
 0x1d5   : > { %v2132_v25 = vadd.f32 %v2126_v24, %v2010_v62 }
 0x1d6   : > { %v3345_v35 = vpop.permute.xlu1 %3344 }
 0x1d7   : > { %v3353_v26 = vsel %vm1179_vm9, %v3345_v35, %v3347_v40  ;;  %v3343_v27 = vpop.permute.xlu0 %3342 }
 0x1d8   : > { %v3352_v37 = vsel %vm1179_vm9, %v3343_v27, %v3345_v35  ;;  %3786 = vmatpush.msk.msra.mxu1 %vm238_vm1, %v3353_v26 }
 0x1d9   : > { %3784 = vmatpush.msk.msra.mxu0 %vm238_vm1, %v3352_v37  ;;  %3787 = vmatmul.msk.f32.vlgmr.msra.gmra.mxu1 %vm234_vm2, %v3783_v15 }
 0x1da   : > { %3785 = vmatmul.msk.f32.vlgmr.msra.gmra.mxu0 %vm234_vm2, %v3783_v15 }
 0x1dc   : > { %v2228_v8 = vpop.f32.mrf.mxu2  ;;  %v2248_v20 = vpop.f32.mrf.mxu3 }
 0x1dd   : > { %v2253_v58 = vadd.f32 %v2228_v8, %v2131_v19  ;;  %v2254_v59 = vadd.f32 %v2248_v20, %v2132_v25 }
 0x1de   : > { %v2208_v12 = vpop.f32.mrf.mxu1  ;;  %v2188_v32 = vpop.f32.mrf.mxu0 }
 0x1df   : > { %v2252_v60 = vadd.f32 %v2208_v12, %v2130_v13  ;;  %v2251_v62 = vadd.f32 %v2188_v32, %v2129_v14 }
 0x1ec   : > { %v2350_v33 = vpop.f32.mrf.mxu2  ;;  %v2370_v39 = vpop.f32.mrf.mxu3 }
 0x1ed   : > { %v2375_v63 = vadd.f32 %v2350_v33, %v2253_v58  ;;  %v2376_v6 = vadd.f32 %v2370_v39, %v2254_v59 }
 0x1ee   : > { %v2310_v38 = vpop.f32.mrf.mxu0 }
 0x1ef   : > { %v2330_v34 = vpop.f32.mrf.mxu1  ;;  %v2373_v10 = vadd.f32 %v2310_v38, %v2251_v62 }
 0x1f0   : > { %v2374_v7 = vadd.f32 %v2330_v34, %v2252_v60 }
 0x1f5   : > { %v2456_v41 = vpop.f32.mrf.mxu2 }
 0x1f6   : > { %v2416_v42 = vpop.f32.mrf.mxu0  ;;  %v2476_v3 = vpop.f32.mrf.mxu3  ;;  %v2481_v0 = vadd.f32 %v2456_v41, %v2375_v63 }
 0x1f7   : > { %v2436_v29 = vpop.f32.mrf.mxu1  ;;  %v2482_v16 = vadd.f32 %v2476_v3, %v2376_v6  ;;  %v2479_v17 = vadd.f32 %v2416_v42, %v2373_v10 }
 0x1f8   : > { %v2480_v18 = vadd.f32 %v2436_v29, %v2374_v7 }
 0x1fd   : > { %v2577_v28 = vpop.f32.mrf.mxu2 }
 0x1fe   : > { %v2537_v43 = vpop.f32.mrf.mxu0  ;;  %v2597_v4 = vpop.f32.mrf.mxu3  ;;  %v2602_v21 = vadd.f32 %v2577_v28, %v2481_v0 }
 0x1ff   : > { %v2557_v31 = vpop.f32.mrf.mxu1  ;;  %v2603_v36 = vadd.f32 %v2597_v4, %v2482_v16  ;;  %v2600_v22 = vadd.f32 %v2537_v43, %v2479_v17 }
 0x200   : > { %v2601_v40 = vadd.f32 %v2557_v31, %v2480_v18 }
 0x205   : > { %v2698_v2 = vpop.f32.mrf.mxu2 }
 0x206   : > { %v2658_v45 = vpop.f32.mrf.mxu0  ;;  %v2718_v46 = vpop.f32.mrf.mxu3  ;;  %v2723_v19 = vadd.f32 %v2698_v2, %v2602_v21 }
 0x207   : > { %v2678_v44 = vpop.f32.mrf.mxu1  ;;  %v2724_v15 = vadd.f32 %v2718_v46, %v2603_v36  ;;  %v2721_v23 = vadd.f32 %v2658_v45, %v2600_v22  ;;  %v3455_v2 = vpop.permute.xlu2 %3454 }
 0x208   : > { %v2722_v13 = vadd.f32 %v2678_v44, %v2601_v40 }
 0x214   : > { %v2819_v47 = vpop.f32.mrf.mxu2  ;;  %v2839_v51 = vpop.f32.mrf.mxu3 }
 0x215   : > { %v2844_v14 = vadd.f32 %v2819_v47, %v2723_v19  ;;  %v2845_v24 = vadd.f32 %v2839_v51, %v2724_v15 }
 0x216   : > { %v2779_v49 = vpop.f32.mrf.mxu0 }
 0x217   : > { %v2799_v48 = vpop.f32.mrf.mxu1  ;;  %v2842_v26 = vadd.f32 %v2779_v49, %v2721_v23 }
 0x218   : > { %v2843_v25 = vadd.f32 %v2799_v48, %v2722_v13 }
 0x21d   : > { %v2940_v50 = vpop.f32.mrf.mxu2 }
 0x21e   : > { %v2900_v55 = vpop.f32.mrf.mxu0  ;;  %v2965_v27 = vadd.f32 %v2940_v50, %v2844_v14  ;;  %v3465_v50 = vpop.permute.xlu0 %3464 }
 0x21f   : > { %v2920_v52 = vpop.f32.mrf.mxu1  ;;  %v2963_v20 = vadd.f32 %v2900_v55, %v2842_v26 }
 0x220   : > { %v2964_v8 = vadd.f32 %v2920_v52, %v2843_v25 }
 0x224   : > { %v2960_v54 = vpop.f32.mrf.mxu3 }
 0x225   : > { %v2966_v12 = vadd.f32 %v2960_v54, %v2845_v24 }
 0x22c   : > { %v3061_v53 = vpop.f32.mrf.mxu2  ;;  %v3081_v57 = vpop.f32.mrf.mxu3 }
 0x22d   : > { %v3086_v33 = vadd.f32 %v3061_v53, %v2965_v27  ;;  %v3087_v34 = vadd.f32 %v3081_v57, %v2966_v12 }
 0x22e   : > { %v3041_v11 = vpop.f32.mrf.mxu1  ;;  %v3021_v56 = vpop.f32.mrf.mxu0 }
 0x22f   : > { %v3085_v38 = vadd.f32 %v3041_v11, %v2964_v8  ;;  %v3084_v39 = vadd.f32 %v3021_v56, %v2963_v20 }
 0x23d   : > { %v3182_v61 = vpop.f32.mrf.mxu2  ;;  %v3202_v1 = vpop.f32.mrf.mxu3 }
 0x23e   : > { %v3207_v41 = vadd.f32 %v3182_v61, %v3086_v33  ;;  %v3208_v29 = vadd.f32 %v3202_v1, %v3087_v34 }
 0x23f   : > { %v3162_v5 = vpop.f32.mrf.mxu1  ;;  %v3142_v9 = vpop.f32.mrf.mxu0 }
 0x240   : > { %v3206_v42 = vadd.f32 %v3162_v5, %v3085_v38  ;;  %v3205_v3 = vadd.f32 %v3142_v9, %v3084_v39 }
 0x246   : > { %v3303_v35 = vpop.f32.mrf.mxu2 }
 0x247   : > { %v3283_v37 = vpop.f32.mrf.mxu1  ;;  %v3263_v32 = vpop.f32.mrf.mxu0  ;;  %v3328_v28 = vadd.f32 %v3303_v35, %v3207_v41 }
 0x248   : > { %v3327_v31 = vadd.f32 %v3283_v37, %v3206_v42  ;;  %v3326_v44 = vadd.f32 %v3263_v32, %v3205_v3 }
 0x24e   : > { %v3323_v30 = vpop.f32.mrf.mxu3 }
 0x24f   : > { %v3329_v43 = vadd.f32 %v3323_v30, %v3208_v29 }
 0x255   : > { %v3424_v4 = vpop.f32.mrf.mxu2 }
 0x256   : > { %v3449_v45 = vadd.f32 %v3424_v4, %v3328_v28  ;;  %v3444_v46 = vpop.f32.mrf.mxu3  ;;  %v3404_v47 = vpop.f32.mrf.mxu1 }
 0x257   : > { %v3450_v48 = vadd.f32 %v3444_v46, %v3329_v43  ;;  %v3384_v49 = vpop.f32.mrf.mxu0  ;;  %v3448_v51 = vadd.f32 %v3404_v47, %v3327_v31 }
 0x258   : > { %v3459_v52 = vmul.f32 %v3455_v2, %v3449_v45  ;;  %v3447_v54 = vadd.f32 %v3384_v49, %v3326_v44 }
 0x259   : > { %v3460_v55 = vmul.f32 %v3455_v2, %v3450_v48  ;;  %v3458_v53 = vmul.f32 %v3455_v2, %v3448_v51 }
 0x25a   : > { %v3457_v11 = vmul.f32 %v3455_v2, %v3447_v54  ;;  %v3469_v56 = vadd.f32 %v3465_v50, %v3459_v52 }
 0x25b   : > { %v3468_v57 = vadd.f32 %v3465_v50, %v3458_v53  ;;  %v3470_v58 = vadd.f32 %v3465_v50, %v3460_v55 }
 0x25c   : > { %v3467_v59 = vadd.f32 %v3465_v50, %v3457_v11  ;;  %vm3473_vm0 = vcmp.ge.f32.partialorder %v3469_v56, 0.0  ;;  %v3477_v60 = vmul.f32 0.01, %v3469_v56 }
 0x25d   : > { %vm3472_vm1 = vcmp.ge.f32.partialorder %v3468_v57, 0.0  ;;  %vm3474_vm2 = vcmp.ge.f32.partialorder %v3470_v58, 0.0  ;;  %v3476_v61 = vmul.f32 0.01, %v3468_v57  ;;  %v3478_v62 = vmul.f32 0.01, %v3470_v58 }
 0x25e   : > { %vm3471_vm3 = vcmp.ge.f32.partialorder %v3467_v59, 0.0  ;;  %v3475_v63 = vmul.f32 0.01, %v3467_v59  ;;  %v3481_v5 = vsel %vm3473_vm0, %v3469_v56, %v3477_v60 }
 0x25f   : > { %v3480_v6 = vsel %vm3472_vm1, %v3468_v57, %v3476_v61  ;;  %v3482_v7 = vsel %vm3474_vm2, %v3470_v58, %v3478_v62  ;;  %3485 = vst [vmem:[%s197_s9 + $0x10] sm:$0xff] %v3481_v5 }
 0x260   : > { %v3479_v9 = vsel %vm3471_vm3, %v3467_v59, %v3475_v63  ;;  %3484 = vst [vmem:[%s197_s9 + $0x8] sm:$0xff] %v3480_v6 }
 0x261   : > { %3483 = vst [vmem:[%s197_s9] sm:$0xff] %v3479_v9 }
 0x262   : > { %3486 = vst [vmem:[%s197_s9 + $0x18] sm:$0xff] %v3482_v7 }
 0x263 PF: > { %s14_s15 = sadd.s32 1, %s3830_s15  }
 0x264   : > { %p11_p4 = scmp.ge.s32.totalorder %s14_s15, 4  }
 0x266   :  { %13 = sbr.rel (!%p11_p4) target bundleno = 1 (0x1), region = 145 }

</bundles_post_ra>
